<compile_context>
chip_gen: v6e
topology: v6e:2x2x1
jax: 0.10.0
libtpu: 0.0.40
codegen_flags: <defaults>
</compile_context>

<pallas_src>
import functools

import jax
import jax.numpy as jnp
from jax import lax
from jax.experimental import pallas as pl
from jax.experimental.pallas import tpu as pltpu


def _round_up(x, m):
    return (x + m - 1) // m * m


def _vmem_limit_bytes():
    """Per-chip scoped-VMEM budget (v5e/v6e: 128 MiB physical, v7x: 64 MiB)."""
    try:
        cap = int(pltpu.get_tpu_info().vmem_capacity_bytes)
        return min(cap * 3 // 4, 100 * 1024 * 1024)
    except Exception:
        return 48 * 1024 * 1024  # conservative: fits v7x's 64 MiB physical VMEM


def _conv_stats_kernel(x_ref, w_ref, y_ref, ps_ref, *,
                       KH, KW, OH, OW, stride, dilation):
    """Pass 1 (one image per grid step): fused-im2col conv + per-image channel stats.

    x_ref : [Hp, Wp, Cin]        padded NHWC image slab (bf16)
    w_ref : [KH*KW, Cpad, Cin]   channel-major weights (bf16), resident (constant index)
    y_ref : [Cpad, OH*OW]        raw conv output, channel-major (bf16)
    ps_ref: [Cpad, 2]            per-image [sum(y), sum(y*y)] over spatial positions (f32)
    """
    cpad = y_ref.shape[0]
    cin = x_ref.shape[-1]
    ohow = OH * OW
    acc = jnp.zeros((cpad, ohow), jnp.float32)
    for kh in range(KH):
        for kw in range(KW):
            h0 = kh * dilation
            w0 = kw * dilation
            if stride == 1:
                slab = x_ref[h0:h0 + OH, w0:w0 + OW, :]          # [OH, OW, Cin]
            else:
                slab = x_ref[pl.ds(h0, OH, stride), pl.ds(w0, OW, stride), :]
            patches = slab.reshape(ohow, cin)                     # leading-dim merge only
            # A @ B^T: [Cpad, Cin] x [OH*OW, Cin] -> [Cpad, OH*OW]  (channel-major output)
            acc = acc + lax.dot_general(
                w_ref[kh * KW + kw], patches,
                dimension_numbers=(((1,), (1,)), ((), ())),
                preferred_element_type=jnp.float32)
    y_ref[...] = acc.astype(y_ref.dtype)                          # bf16 intermediate
    ps_ref[:, 0:1] = jnp.sum(acc, axis=1, keepdims=True)          # stats from f32 acc
    ps_ref[:, 1:2] = jnp.sum(acc * acc, axis=1, keepdims=True)


def _bn_prelu_kernel(y_ref, scale_ref, shift_ref, alpha_ref, o_ref, *, use_relu):
    """Pass 2: per-channel affine (BN folded into scale/shift) + PReLU on channel-major tiles."""
    z = y_ref[...].astype(jnp.float32) * scale_ref[...] + shift_ref[...]
    if use_relu:
        z = jnp.where(z >= 0, z, alpha_ref[...] * z)
    o_ref[...] = z


def conv_bn_prelu(x_nchw, weight, gamma, beta, alpha, *, stride=1, padding=0,
                  dilation=1, use_relu=True, eps=1e-5):
    """Forward of ConvBNRelu. x_nchw: [N, Cin, H, W], weight: [Cout, Cin, KH, KW]."""
    N, Cin, H, W = x_nchw.shape
    Cout, _, KH, KW = weight.shape

    Hp, Wp = H + 2 * padding, W + 2 * padding
    OH = (Hp - dilation * (KH - 1) - 1) // stride + 1
    OW = (Wp - dilation * (KW - 1) - 1) // stride + 1
    OHOW = OH * OW
    M = N * OHOW
    Cpad = _round_up(Cout, 8)            # channels live on sublanes -> pad to 8, not 128

    # ---- plain-JAX glue on the (small) input: NHWC, spatial zero-pad, bf16 cast ----
    x = jnp.transpose(x_nchw, (0, 2, 3, 1))
    xp = jnp.pad(x, ((0, 0), (padding, padding), (padding, padding), (0, 0)))
    xp = xp.astype(jnp.bfloat16)

    # weights: [Cout, Cin, KH, KW] -> [KH*KW, Cpad, Cin] (channel-major, bf16)
    w_t = jnp.transpose(weight, (2, 3, 0, 1)).reshape(KH * KW, Cout, Cin)
    w_t = jnp.pad(w_t, ((0, 0), (0, Cpad - Cout), (0, 0))).astype(jnp.bfloat16)

    cparams = pltpu.CompilerParams(
        dimension_semantics=("parallel",),        # one image per step; 2-TC split on v7x
        vmem_limit_bytes=_vmem_limit_bytes(),
    )

    # ---- pass 1: fused im2col conv (bf16 MXU, f32 acc) + per-image channel stats ----
    kern1 = functools.partial(_conv_stats_kernel, KH=KH, KW=KW, OH=OH, OW=OW,
                              stride=stride, dilation=dilation)
    y, part_stats = pl.pallas_call(
        kern1,
        out_shape=(jax.ShapeDtypeStruct((N, Cpad, OHOW), jnp.bfloat16),
                   jax.ShapeDtypeStruct((N, Cpad, 2), jnp.float32)),
        grid=(N,),
        in_specs=[
            pl.BlockSpec((None, Hp, Wp, Cin), lambda n: (n, 0, 0, 0)),
            pl.BlockSpec((KH * KW, Cpad, Cin), lambda n: (0, 0, 0)),
        ],
        out_specs=(
            pl.BlockSpec((None, Cpad, OHOW), lambda n: (n, 0, 0)),
            pl.BlockSpec((None, Cpad, 2), lambda n: (n, 0, 0)),
        ),
        compiler_params=cparams,
        cost_estimate=pl.CostEstimate(
            flops=2 * M * KH * KW * Cin * Cpad,
            transcendentals=0,
            bytes_accessed=(N * Hp * Wp * Cin * 2 + KH * KW * Cpad * Cin * 2
                            + N * Cpad * OHOW * 2 + N * Cpad * 2 * 4),
        ),
    )(xp, w_t)

    # ---- tiny XLA glue: finalize batch stats once, fold BN into per-channel scale/shift ----
    sums = part_stats.sum(axis=0)                                  # [Cpad, 2]
    mean = sums[:, 0:1] / M                                        # [Cpad, 1]
    var = jnp.maximum(sums[:, 1:2] / M - mean * mean, 0.0)         # biased batch variance
    gamma_p = jnp.pad(gamma.astype(jnp.float32), (0, Cpad - Cout)).reshape(Cpad, 1)
    beta_p = jnp.pad(beta.astype(jnp.float32), (0, Cpad - Cout)).reshape(Cpad, 1)
    scale = gamma_p * lax.rsqrt(var + eps)                         # [Cpad, 1]
    shift = beta_p - mean * scale                                  # [Cpad, 1]
    alpha_v = jnp.asarray(alpha if alpha is not None else 0.0, jnp.float32).reshape(-1)
    if alpha_v.shape[0] == 1:
        alpha_p = jnp.broadcast_to(alpha_v, (Cpad,)).reshape(Cpad, 1)
    else:                                                          # per-channel PReLU
        alpha_p = jnp.pad(alpha_v, (0, Cpad - Cout)).reshape(Cpad, 1)

    # ---- pass 2: BN affine + PReLU on channel-major tiles (output already NCHW-ordered) ----
    kern2 = functools.partial(_bn_prelu_kernel, use_relu=use_relu)
    out_cm = pl.pallas_call(
        kern2,
        out_shape=jax.ShapeDtypeStruct((N, Cpad, OHOW), jnp.float32),
        grid=(N,),
        in_specs=[
            pl.BlockSpec((None, Cpad, OHOW), lambda n: (n, 0, 0)),
            pl.BlockSpec((Cpad, 1), lambda n: (0, 0)),
            pl.BlockSpec((Cpad, 1), lambda n: (0, 0)),
            pl.BlockSpec((Cpad, 1), lambda n: (0, 0)),
        ],
        out_specs=pl.BlockSpec((None, Cpad, OHOW), lambda n: (n, 0, 0)),
        compiler_params=cparams,
        cost_estimate=pl.CostEstimate(
            flops=4 * N * Cpad * OHOW,
            transcendentals=0,
            bytes_accessed=N * Cpad * OHOW * (2 + 4) + 3 * Cpad * 4,
        ),
    )(y, scale, shift, alpha_p)

    # channel-major [N, Cpad, OH*OW] -> NCHW. Slice is a no-op when Cout % 8 == 0 and the
    # reshape is free (memory layout already matches), so no XLA transpose pass remains.
    return out_cm[:, :Cout, :].reshape(N, Cout, OH, OW)


if __name__ == "__main__":
    # ConvBNRelu(in_planes=4, out_planes=8, kernel_size=3, stride=1, padding=1)
    N, Cin, H, W = 2, 4, 16, 16
    Cout, KH, KW = 8, 3, 3
    stride, padding, dilation = 1, 1, 1
    eps = 1e-5

    key = jax.random.PRNGKey(0)
    kx, kw = jax.random.split(key)
    x = jax.random.normal(kx, (N, Cin, H, W), dtype=jnp.float32)
    weight = 0.1 * jax.random.normal(kw, (Cout, Cin, KH, KW), dtype=jnp.float32)
    gamma = jnp.ones((Cout,), jnp.float32)      # BatchNorm2d default weight
    beta = jnp.zeros((Cout,), jnp.float32)      # BatchNorm2d default bias
    alpha = jnp.array([0.25], jnp.float32)      # nn.PReLU() default slope

    out = conv_bn_prelu(x, weight, gamma, beta, alpha,
                        stride=stride, padding=padding, dilation=dilation,
                        use_relu=True, eps=eps)
    out = jax.block_until_ready(out)

    # Pure-JAX f32 reference (conv via lax, BN training-mode stats, PReLU).
    conv_ref = jax.lax.conv_general_dilated(
        x, weight, window_strides=(stride, stride),
        padding=[(padding, padding), (padding, padding)],
        rhs_dilation=(dilation, dilation),
        dimension_numbers=("NCHW", "OIHW", "NCHW"))
    mu = conv_ref.mean(axis=(0, 2, 3), keepdims=True)
    var = jnp.square(conv_ref - mu).mean(axis=(0, 2, 3), keepdims=True)
    ref = (conv_ref - mu) / jnp.sqrt(var + eps)
    ref = ref * gamma.reshape(1, -1, 1, 1) + beta.reshape(1, -1, 1, 1)
    ref = jnp.where(ref >= 0, ref, alpha[0] * ref)

    assert out.shape == (N, Cout, H, W), out.shape
    # bf16 MXU operands + bf16 y intermediate -> looser tolerance than a pure-f32 conv.
    assert jnp.allclose(out, ref, atol=5e-2, rtol=5e-2), float(jnp.abs(out - ref).max())

    print("KERNEL_OK")
</pallas_src>

<mosaic_0001>
module attributes {stable_mosaic.version = 11 : i64} {
  func.func @_conv_stats_kernel(%arg0: i32, %arg1: memref<1x18x18x4xbf16, #tpu.memory_space<vmem>>, %arg2: memref<9x8x4xbf16, #tpu.memory_space<vmem>>, %arg3: memref<1x8x256xbf16, #tpu.memory_space<vmem>>, %arg4: memref<1x8x2xf32, #tpu.memory_space<vmem>>) attributes {dimension_semantics = [#tpu.dimension_semantics<parallel>], iteration_bounds = array<i64: 2>, scalar_prefetch = 0 : i64, scratch_operands = 0 : i64, tpu.core_type = #tpu.core_type<tc>, window_params = [{transform_indices = @transform_0, window_bounds = array<i64: 1, 18, 18, 4>}, {pipeline_mode = #tpu.pipeline_mode<synchronous>, transform_indices = @transform_1, window_bounds = array<i64: 9, 8, 4>}, {transform_indices = @transform_2, window_bounds = array<i64: 1, 8, 256>}, {transform_indices = @transform_3, window_bounds = array<i64: 1, 8, 2>}]} {
    %cst = arith.constant 0.000000e+00 : f32
    %0 = vector.broadcast %cst : f32 to vector<8x256xf32>
    %c0 = arith.constant 0 : index
    %c0_0 = arith.constant 0 : index
    %c0_1 = arith.constant 0 : index
    %c0_2 = arith.constant 0 : index
    %1 = vector.load %arg1[%c0, %c0_0, %c0_1, %c0_2] : memref<1x18x18x4xbf16, #tpu.memory_space<vmem>>, vector<1x16x16x4xbf16>
    %2 = vector.shape_cast %1 : vector<1x16x16x4xbf16> to vector<16x16x4xbf16>
    %3 = vector.shape_cast %2 : vector<16x16x4xbf16> to vector<256x4xbf16>
    %c0_3 = arith.constant 0 : index
    %c0_4 = arith.constant 0 : index
    %c0_5 = arith.constant 0 : index
    %4 = vector.load %arg2[%c0_3, %c0_4, %c0_5] : memref<9x8x4xbf16, #tpu.memory_space<vmem>>, vector<1x8x4xbf16>
    %5 = vector.shape_cast %4 : vector<1x8x4xbf16> to vector<8x4xbf16>
    %cst_6 = arith.constant dense<0.000000e+00> : vector<8x256xf32>
    %6 = tpu.matmul %5, %3, %cst_6 {dimension_numbers = #tpu.dot_dimension_numbers<[1], [1], [0], [0], [0, 0, 1, 0], [], []>} : vector<8x4xbf16>, vector<256x4xbf16>, vector<8x256xf32> -> vector<8x256xf32>
    %7 = arith.addf %0, %6 : vector<8x256xf32>
    %c0_7 = arith.constant 0 : index
    %c0_8 = arith.constant 0 : index
    %c1 = arith.constant 1 : index
    %c0_9 = arith.constant 0 : index
    %8 = vector.load %arg1[%c0_7, %c0_8, %c1, %c0_9] : memref<1x18x18x4xbf16, #tpu.memory_space<vmem>>, vector<1x16x16x4xbf16>
    %9 = vector.shape_cast %8 : vector<1x16x16x4xbf16> to vector<16x16x4xbf16>
    %10 = vector.shape_cast %9 : vector<16x16x4xbf16> to vector<256x4xbf16>
    %c1_10 = arith.constant 1 : index
    %c0_11 = arith.constant 0 : index
    %c0_12 = arith.constant 0 : index
    %11 = vector.load %arg2[%c1_10, %c0_11, %c0_12] : memref<9x8x4xbf16, #tpu.memory_space<vmem>>, vector<1x8x4xbf16>
    %12 = vector.shape_cast %11 : vector<1x8x4xbf16> to vector<8x4xbf16>
    %cst_13 = arith.constant dense<0.000000e+00> : vector<8x256xf32>
    %13 = tpu.matmul %12, %10, %cst_13 {dimension_numbers = #tpu.dot_dimension_numbers<[1], [1], [0], [0], [0, 0, 1, 0], [], []>} : vector<8x4xbf16>, vector<256x4xbf16>, vector<8x256xf32> -> vector<8x256xf32>
    %14 = arith.addf %7, %13 : vector<8x256xf32>
    %c0_14 = arith.constant 0 : index
    %c0_15 = arith.constant 0 : index
    %c2 = arith.constant 2 : index
    %c0_16 = arith.constant 0 : index
    %15 = vector.load %arg1[%c0_14, %c0_15, %c2, %c0_16] : memref<1x18x18x4xbf16, #tpu.memory_space<vmem>>, vector<1x16x16x4xbf16>
    %16 = vector.shape_cast %15 : vector<1x16x16x4xbf16> to vector<16x16x4xbf16>
    %17 = vector.shape_cast %16 : vector<16x16x4xbf16> to vector<256x4xbf16>
    %c2_17 = arith.constant 2 : index
    %c0_18 = arith.constant 0 : index
    %c0_19 = arith.constant 0 : index
    %18 = vector.load %arg2[%c2_17, %c0_18, %c0_19] : memref<9x8x4xbf16, #tpu.memory_space<vmem>>, vector<1x8x4xbf16>
    %19 = vector.shape_cast %18 : vector<1x8x4xbf16> to vector<8x4xbf16>
    %cst_20 = arith.constant dense<0.000000e+00> : vector<8x256xf32>
    %20 = tpu.matmul %19, %17, %cst_20 {dimension_numbers = #tpu.dot_dimension_numbers<[1], [1], [0], [0], [0, 0, 1, 0], [], []>} : vector<8x4xbf16>, vector<256x4xbf16>, vector<8x256xf32> -> vector<8x256xf32>
    %21 = arith.addf %14, %20 : vector<8x256xf32>
    %c0_21 = arith.constant 0 : index
    %c1_22 = arith.constant 1 : index
    %c0_23 = arith.constant 0 : index
    %c0_24 = arith.constant 0 : index
    %22 = vector.load %arg1[%c0_21, %c1_22, %c0_23, %c0_24] : memref<1x18x18x4xbf16, #tpu.memory_space<vmem>>, vector<1x16x16x4xbf16>
    %23 = vector.shape_cast %22 : vector<1x16x16x4xbf16> to vector<16x16x4xbf16>
    %24 = vector.shape_cast %23 : vector<16x16x4xbf16> to vector<256x4xbf16>
    %c3 = arith.constant 3 : index
    %c0_25 = arith.constant 0 : index
    %c0_26 = arith.constant 0 : index
    %25 = vector.load %arg2[%c3, %c0_25, %c0_26] : memref<9x8x4xbf16, #tpu.memory_space<vmem>>, vector<1x8x4xbf16>
    %26 = vector.shape_cast %25 : vector<1x8x4xbf16> to vector<8x4xbf16>
    %cst_27 = arith.constant dense<0.000000e+00> : vector<8x256xf32>
    %27 = tpu.matmul %26, %24, %cst_27 {dimension_numbers = #tpu.dot_dimension_numbers<[1], [1], [0], [0], [0, 0, 1, 0], [], []>} : vector<8x4xbf16>, vector<256x4xbf16>, vector<8x256xf32> -> vector<8x256xf32>
    %28 = arith.addf %21, %27 : vector<8x256xf32>
    %c0_28 = arith.constant 0 : index
    %c1_29 = arith.constant 1 : index
    %c1_30 = arith.constant 1 : index
    %c0_31 = arith.constant 0 : index
    %29 = vector.load %arg1[%c0_28, %c1_29, %c1_30, %c0_31] : memref<1x18x18x4xbf16, #tpu.memory_space<vmem>>, vector<1x16x16x4xbf16>
    %30 = vector.shape_cast %29 : vector<1x16x16x4xbf16> to vector<16x16x4xbf16>
    %31 = vector.shape_cast %30 : vector<16x16x4xbf16> to vector<256x4xbf16>
    %c4 = arith.constant 4 : index
    %c0_32 = arith.constant 0 : index
    %c0_33 = arith.constant 0 : index
    %32 = vector.load %arg2[%c4, %c0_32, %c0_33] : memref<9x8x4xbf16, #tpu.memory_space<vmem>>, vector<1x8x4xbf16>
    %33 = vector.shape_cast %32 : vector<1x8x4xbf16> to vector<8x4xbf16>
    %cst_34 = arith.constant dense<0.000000e+00> : vector<8x256xf32>
    %34 = tpu.matmul %33, %31, %cst_34 {dimension_numbers = #tpu.dot_dimension_numbers<[1], [1], [0], [0], [0, 0, 1, 0], [], []>} : vector<8x4xbf16>, vector<256x4xbf16>, vector<8x256xf32> -> vector<8x256xf32>
    %35 = arith.addf %28, %34 : vector<8x256xf32>
    %c0_35 = arith.constant 0 : index
    %c1_36 = arith.constant 1 : index
    %c2_37 = arith.constant 2 : index
    %c0_38 = arith.constant 0 : index
    %36 = vector.load %arg1[%c0_35, %c1_36, %c2_37, %c0_38] : memref<1x18x18x4xbf16, #tpu.memory_space<vmem>>, vector<1x16x16x4xbf16>
    %37 = vector.shape_cast %36 : vector<1x16x16x4xbf16> to vector<16x16x4xbf16>
    %38 = vector.shape_cast %37 : vector<16x16x4xbf16> to vector<256x4xbf16>
    %c5 = arith.constant 5 : index
    %c0_39 = arith.constant 0 : index
    %c0_40 = arith.constant 0 : index
    %39 = vector.load %arg2[%c5, %c0_39, %c0_40] : memref<9x8x4xbf16, #tpu.memory_space<vmem>>, vector<1x8x4xbf16>
    %40 = vector.shape_cast %39 : vector<1x8x4xbf16> to vector<8x4xbf16>
    %cst_41 = arith.constant dense<0.000000e+00> : vector<8x256xf32>
    %41 = tpu.matmul %40, %38, %cst_41 {dimension_numbers = #tpu.dot_dimension_numbers<[1], [1], [0], [0], [0, 0, 1, 0], [], []>} : vector<8x4xbf16>, vector<256x4xbf16>, vector<8x256xf32> -> vector<8x256xf32>
    %42 = arith.addf %35, %41 : vector<8x256xf32>
    %c0_42 = arith.constant 0 : index
    %c2_43 = arith.constant 2 : index
    %c0_44 = arith.constant 0 : index
    %c0_45 = arith.constant 0 : index
    %43 = vector.load %arg1[%c0_42, %c2_43, %c0_44, %c0_45] : memref<1x18x18x4xbf16, #tpu.memory_space<vmem>>, vector<1x16x16x4xbf16>
    %44 = vector.shape_cast %43 : vector<1x16x16x4xbf16> to vector<16x16x4xbf16>
    %45 = vector.shape_cast %44 : vector<16x16x4xbf16> to vector<256x4xbf16>
    %c6 = arith.constant 6 : index
    %c0_46 = arith.constant 0 : index
    %c0_47 = arith.constant 0 : index
    %46 = vector.load %arg2[%c6, %c0_46, %c0_47] : memref<9x8x4xbf16, #tpu.memory_space<vmem>>, vector<1x8x4xbf16>
    %47 = vector.shape_cast %46 : vector<1x8x4xbf16> to vector<8x4xbf16>
    %cst_48 = arith.constant dense<0.000000e+00> : vector<8x256xf32>
    %48 = tpu.matmul %47, %45, %cst_48 {dimension_numbers = #tpu.dot_dimension_numbers<[1], [1], [0], [0], [0, 0, 1, 0], [], []>} : vector<8x4xbf16>, vector<256x4xbf16>, vector<8x256xf32> -> vector<8x256xf32>
    %49 = arith.addf %42, %48 : vector<8x256xf32>
    %c0_49 = arith.constant 0 : index
    %c2_50 = arith.constant 2 : index
    %c1_51 = arith.constant 1 : index
    %c0_52 = arith.constant 0 : index
    %50 = vector.load %arg1[%c0_49, %c2_50, %c1_51, %c0_52] : memref<1x18x18x4xbf16, #tpu.memory_space<vmem>>, vector<1x16x16x4xbf16>
    %51 = vector.shape_cast %50 : vector<1x16x16x4xbf16> to vector<16x16x4xbf16>
    %52 = vector.shape_cast %51 : vector<16x16x4xbf16> to vector<256x4xbf16>
    %c7 = arith.constant 7 : index
    %c0_53 = arith.constant 0 : index
    %c0_54 = arith.constant 0 : index
    %53 = vector.load %arg2[%c7, %c0_53, %c0_54] : memref<9x8x4xbf16, #tpu.memory_space<vmem>>, vector<1x8x4xbf16>
    %54 = vector.shape_cast %53 : vector<1x8x4xbf16> to vector<8x4xbf16>
    %cst_55 = arith.constant dense<0.000000e+00> : vector<8x256xf32>
    %55 = tpu.matmul %54, %52, %cst_55 {dimension_numbers = #tpu.dot_dimension_numbers<[1], [1], [0], [0], [0, 0, 1, 0], [], []>} : vector<8x4xbf16>, vector<256x4xbf16>, vector<8x256xf32> -> vector<8x256xf32>
    %56 = arith.addf %49, %55 : vector<8x256xf32>
    %c0_56 = arith.constant 0 : index
    %c2_57 = arith.constant 2 : index
    %c2_58 = arith.constant 2 : index
    %c0_59 = arith.constant 0 : index
    %57 = vector.load %arg1[%c0_56, %c2_57, %c2_58, %c0_59] : memref<1x18x18x4xbf16, #tpu.memory_space<vmem>>, vector<1x16x16x4xbf16>
    %58 = vector.shape_cast %57 : vector<1x16x16x4xbf16> to vector<16x16x4xbf16>
    %59 = vector.shape_cast %58 : vector<16x16x4xbf16> to vector<256x4xbf16>
    %c8 = arith.constant 8 : index
    %c0_60 = arith.constant 0 : index
    %c0_61 = arith.constant 0 : index
    %60 = vector.load %arg2[%c8, %c0_60, %c0_61] : memref<9x8x4xbf16, #tpu.memory_space<vmem>>, vector<1x8x4xbf16>
    %61 = vector.shape_cast %60 : vector<1x8x4xbf16> to vector<8x4xbf16>
    %cst_62 = arith.constant dense<0.000000e+00> : vector<8x256xf32>
    %62 = tpu.matmul %61, %59, %cst_62 {dimension_numbers = #tpu.dot_dimension_numbers<[1], [1], [0], [0], [0, 0, 1, 0], [], []>} : vector<8x4xbf16>, vector<256x4xbf16>, vector<8x256xf32> -> vector<8x256xf32>
    %63 = arith.addf %56, %62 : vector<8x256xf32>
    %64 = arith.truncf %63 : vector<8x256xf32> to vector<8x256xbf16>
    %c0_63 = arith.constant 0 : index
    %c0_64 = arith.constant 0 : index
    %c0_65 = arith.constant 0 : index
    %65 = vector.load %arg3[%c0_63, %c0_64, %c0_65] : memref<1x8x256xbf16, #tpu.memory_space<vmem>>, vector<1x8x256xbf16>
    %66 = vector.shape_cast %65 : vector<1x8x256xbf16> to vector<8x256xbf16>
    %67 = vector.shape_cast %64 : vector<8x256xbf16> to vector<1x8x256xbf16>
    tpu.vector_store %arg3[%c0_63, %c0_64, %c0_65], %67 {strides = array<i32>} : memref<1x8x256xbf16, #tpu.memory_space<vmem>>, vector<1x8x256xbf16>,
    %cst_66 = arith.constant dense<0.000000e+00> : vector<8xf32>
    %68 = vector.multi_reduction <add>, %63, %cst_66 [1] : vector<8x256xf32> to vector<8xf32>
    %69 = vector.shape_cast %68 : vector<8xf32> to vector<8x1xf32>
    %c0_67 = arith.constant 0 : index
    %c0_68 = arith.constant 0 : index
    %c0_69 = arith.constant 0 : index
    %70 = vector.load %arg4[%c0_67, %c0_68, %c0_69] : memref<1x8x2xf32, #tpu.memory_space<vmem>>, vector<1x8x1xf32>
    %71 = vector.shape_cast %70 : vector<1x8x1xf32> to vector<8x1xf32>
    %72 = vector.shape_cast %69 : vector<8x1xf32> to vector<1x8x1xf32>
    tpu.vector_store %arg4[%c0_67, %c0_68, %c0_69], %72 {strides = array<i32>} : memref<1x8x2xf32, #tpu.memory_space<vmem>>, vector<1x8x1xf32>,
    %73 = arith.mulf %63, %63 : vector<8x256xf32>
    %cst_70 = arith.constant dense<0.000000e+00> : vector<8xf32>
    %74 = vector.multi_reduction <add>, %73, %cst_70 [1] : vector<8x256xf32> to vector<8xf32>
    %75 = vector.shape_cast %74 : vector<8xf32> to vector<8x1xf32>
    %c0_71 = arith.constant 0 : index
    %c0_72 = arith.constant 0 : index
    %c1_73 = arith.constant 1 : index
    %76 = vector.load %arg4[%c0_71, %c0_72, %c1_73] : memref<1x8x2xf32, #tpu.memory_space<vmem>>, vector<1x8x1xf32>
    %77 = vector.shape_cast %76 : vector<1x8x1xf32> to vector<8x1xf32>
    %78 = vector.shape_cast %75 : vector<8x1xf32> to vector<1x8x1xf32>
    tpu.vector_store %arg4[%c0_71, %c0_72, %c1_73], %78 {strides = array<i32>} : memref<1x8x2xf32, #tpu.memory_space<vmem>>, vector<1x8x1xf32>,
    return
  }
  func.func @transform_0(%arg0: i32) -> (i32, i32, i32, i32) {
    %c0_i32 = arith.constant 0 : i32
    %c0_i32_0 = arith.constant 0 : i32
    %c0_i32_1 = arith.constant 0 : i32
    %c0_i32_2 = arith.constant 0 : i32
    return %arg0, %c0_i32, %c0_i32_0, %c0_i32_1 : i32, i32, i32, i32
  }
  func.func @transform_1(%arg0: i32) -> (i32, i32, i32) {
    %c0_i32 = arith.constant 0 : i32
    %c0_i32_0 = arith.constant 0 : i32
    %c0_i32_1 = arith.constant 0 : i32
    %c0_i32_2 = arith.constant 0 : i32
    return %c0_i32, %c0_i32_0, %c0_i32_1 : i32, i32, i32
  }
  func.func @transform_2(%arg0: i32) -> (i32, i32, i32) {
    %c0_i32 = arith.constant 0 : i32
    %c0_i32_0 = arith.constant 0 : i32
    %c0_i32_1 = arith.constant 0 : i32
    return %arg0, %c0_i32, %c0_i32_0 : i32, i32, i32
  }
  func.func @transform_3(%arg0: i32) -> (i32, i32, i32) {
    %c0_i32 = arith.constant 0 : i32
    %c0_i32_0 = arith.constant 0 : i32
    %c0_i32_1 = arith.constant 0 : i32
    return %arg0, %c0_i32, %c0_i32_0 : i32, i32, i32
  }
}

</mosaic_0001>

<bundles_post_ra>
// kernel: tpu_custom_call.1
= control target key start
LH: loop header
LB: loop body
LE: loop exit
PB: predicated region body
PF: predicated region fallthrough
CT: control target
= control target key end

     0   :  { %9 = vsyncpa [#allocation3], 0  ;;  %s5889_s0 = inlined_call_operand.vmem [shape: bf16[2,18,18,4], index: 0, kind: input, shape index: {}]   ;;  %s5890_s1 = inlined_call_operand.vmem [shape: bf16[9,8,4], index: 1, kind: input, shape index: {}]   ;;  %s5891_s2 = inlined_call_operand.hbm [shape: bf16[2,8,256], index: 2, kind: output, shape index: {0}]   ;;  %s5892_s3 = inlined_call_operand.vmem [shape: f32[2,8,2], index: 3, kind: output, shape index: {1}]  }
   0x1   :  { %11 = vsyncpa [#allocation3 + $0x1], 0  ;;  %s4396_s12 = smov 0   ;;  %s4398_s13 = smov 0  }
   0x2   :  { %s4400_s14 = smov 0   ;;  %s4402_s15 = smov 0  }
   0x3 LB: > { %s4417_s16 = sadd.s32 4294967295, %s4373_s15   ;;  %s3575_s17 = sadd.s32 4294967294, %s4373_s15   ;;  %s4373_s15 = sphi %s4402_s15, %s5902_s15   ;;  %s4369_s14 = sphi %s4400_s14, %s5901_s14   ;;  %s4365_s13 = sphi %s4398_s13, %s5900_s13   ;;  %s4361_s12 = sphi %s4396_s12, %s5899_s12  }
   0x4   : > { %s4421_s18 = sadd.s32 1, %s4373_s15   ;;  %s71_s19 = sadd.s32 1, %s4369_s14 }
   0x5   : > { %s68_s20 = ssub.s32 %s4373_s15, %s4421_s18  ;;  %p81_p0 = scmp.ne.s32.totalorder %s4369_s14, %s4365_s13 }
   0x6   : > { %p69_p1 = scmp.eq.s32.totalorder %s68_s20, 0  ;;  %p82_p2 = scmp.eq.s32.totalorder %s4417_s16, 1 }
   0x7   : > { %p87_p3 = scmp.ne.s32.totalorder %s4365_s13, %s4361_s12  ;;  %p88_p4 = scmp.eq.s32.totalorder %s3575_s17, 1 }
   0x8   : > { %s4432_s21 = scalar_select %p69_p1, %s4369_s14, %s71_s19  }
   0x9   : > { %p4434_p5 = por %p82_p2, %p81_p0  ;;  %p4438_p6 = por %p88_p4, %p87_p3 }
   0xa   : > { %p3578_p7 = scmp.ge.s32.totalorder %s4373_s15, 1  ;;  %p143_p8 = scmp.lt.s32.totalorder %s4373_s15, 3 }
   0xc   : > { %p144_p9 = pnand %p3578_p7, %p143_p8 }
   0xd   : > { %p171_p10 = scmp.lt.s32.totalorder (!%p144_p9), %s4417_s16, 1  ;;  %s162_s30 = sand.u32 (!%p144_p9), 1, %s4365_s13  }
   0xe   : > { %147 = sbr.rel (%p144_p9) target bundleno = 719 (0x2cf), region = 28  ;;  %s3579_s4 = sshll.u32 (!%p144_p9), %s162_s30, 3 }
   0xf   : > { %s3990_s6 = sshll.u32 (!%p144_p9), %s4417_s16, 7  ;;  %s3471_s11 = scalar_lea.sflag (!%p144_p9), [#allocation3], %s162_s30 }
  0x10   : > { %s3487_s9 = scalar_lea.hbm (!%p144_p9), %s5891_s2, %s3990_s6  ;;  %s4375_s19 = smov (!%p144_p9), [#allocation2]  }
  0x11   : > { %s4317_s20 = sshll.u32 (!%p144_p9), %s4375_s19, 4  ;;  %s4318_s20 = int_to_ptr.vmem [resolvable:$false] %s4317_s20 }
  0x12   : > { %s4319_s24 = scalar_lea.vmem (!%p144_p9), %s4318_s20, 256 }
  0x13   : > { %vm667_vm0 = vcmask 31744   ;;  %v4448_v0 = vld [vmem:[%s5890_s1 + $0x4] sm:$0xf]  ;;  %v4453_v1 = vld [vmem:[%s5890_s1] sm:$0xf]  ;;  %s4456_s28 = scalar_select %p171_p10, %s4417_s16, 1 }
  0x14   : > { %4007 = vmatprep.mubr.msk.bf16.mxu0 %vm667_vm0, %v4448_v0  ;;  %4025 = vmatprep.mubr.msk.bf16.mxu1 %vm667_vm0, %v4453_v1  ;;  %vm230_vm1 = vsmask.f32 3328  ;;  %vm231_vm2 = vsmask.f32 7440  ;;  %vm980_vm4 = vcmask 1042432   ;;  %vm981_vm5 = vcmask 1046532  }
  0x15   : > { %s4225_s29 = smul.u32 216, %s4456_s28  ;;  %vm4494_vm3 = vmor %vm230_vm1, %vm231_vm2 }
  0x16   : > { %vm4747_vm6 = vmor %vm980_vm4, %vm981_vm5 }
  0x17   : > { %s4466_s5 = scalar_lea.vmem %s5889_s0, %s4225_s29 }
  0x18   : > { %v211_v2 = vld [vmem:[%s4466_s5 + $0xb4] sm:$0xf]  ;;  %v4470_v3 = vld [vmem:[%s4466_s5 + $0xb8] sm:$0xf]  ;;  %v4473_v4 = vld [vmem:[%s4466_s5 + $0xbc] sm:$0x1] }
  0x19   : > { %v594_v5 = vshrl.u32 %v211_v2, 16  ;;  %v597_v6 = vshll.u32 %v211_v2, 16  ;;  %v603_v7 = vshll.u32 %v4470_v3, 16  ;;  %v607_v8 = vshrl.u32 %v4470_v3, 16  ;;  %v195_v9 = vld [vmem:[%s4466_s5 + $0x54] sm:$0xf] }
  0x1a   : > { %v613_v10 = vshll.u32 %v4473_v4, 16  ;;  %v1093_v11 = vrot.slane %v4473_v4, 5  ;;  %v3615_v12 = vcombine.low %v211_v2, %v4470_v3  ;;  %v4482_v13 = vld [vmem:[%s4466_s5 + $0x58] sm:$0xf]  ;;  %v4485_v14 = vld [vmem:[%s4466_s5 + $0x5c] sm:$0x1] }
  0x1b   : > { %v596_v15 = vrot.slane %v594_v5, 4  ;;  %v599_v16 = vrot.slane %v597_v6, 5  ;;  %v605_v17 = vrot.slane %v603_v7, 5  ;;  %v609_v18 = vrot.slane %v607_v8, 4  ;;  %v209_v27 = vld [vmem:[%s4466_s5 + $0xa8] sm:$0xf] }
  0x1c   : > { %v615_v19 = vrot.slane %v613_v10, 5  ;;  %4161 = vmatprep.subr.msk.bf16.mxu1 %vm667_vm0, %v3615_v12  ;;  %v402_v20 = vshrl.u32 %v195_v9, 16  ;;  %v405_v21 = vshll.u32 %v195_v9, 16  ;;  %v411_v22 = vshll.u32 %v4482_v13, 16  ;;  %v4500_v33 = vld [vmem:[%s4466_s5 + $0xac] sm:$0xf] }
  0x1d   : > { %v600_v23 = vor.u32 %v599_v16, %v596_v15  ;;  %v610_v24 = vor.u32 %v609_v18, %v605_v17  ;;  %v415_v25 = vshrl.u32 %v4482_v13, 16  ;;  %v421_v26 = vshll.u32 %v4485_v14, 16  ;;  %v4508_v45 = vld [vmem:[%s4466_s5 + $0xb0] sm:$0x1]  ;;  %v193_v47 = vld [vmem:[%s4466_s5 + $0x48] sm:$0xf] }
  0x1e   : > { %v404_v29 = vrot.slane %v402_v20, 4  ;;  %v407_v30 = vrot.slane %v405_v21, 5  ;;  %v413_v31 = vrot.slane %v411_v22, 5  ;;  %v1037_v32 = vrot.slane %v4485_v14, 5  ;;  %v4515_v56 = vld [vmem:[%s4466_s5 + $0x4c] sm:$0xf] }
  0x1f   : > { %v601_v34 = vrot.slane %v600_v23, 4  ;;  %v611_v35 = vrot.slane %v610_v24, 4  ;;  %v417_v36 = vrot.slane %v415_v25, 4  ;;  %v423_v37 = vrot.slane %v421_v26, 5  ;;  %v4525_v2 = vld [vmem:[%s4466_s5 + $0x50] sm:$0x1] }
  0x20   : > { %v408_v38 = vor.u32 %v407_v30, %v404_v29  ;;  %v3607_v39 = vcombine.low %v195_v9, %v4482_v13  ;;  %v570_v40 = vshrl.u32 %v209_v27, 16  ;;  %v573_v41 = vshll.u32 %v209_v27, 16  ;;  %v4535_v22 = vld [vmem:[%s4466_s5 + $0xa0] sm:$0xf]  ;;  %v4541_v30 = vld [vmem:[%s4466_s5 + $0xa4] sm:$0x1] }
  0x21   : > { %v606_v42 = vsel %vm4494_vm3, %v601_v34, %v605_v17  ;;  %v616_v43 = vsel %vm4494_vm3, %v611_v35, %v615_v19  ;;  %v418_v44 = vor.u32 %v417_v36, %v413_v31  ;;  %v579_v46 = vshll.u32 %v4500_v33, 16  ;;  %v207_v17 = vld [vmem:[%s4466_s5 + $0x9c] sm:$0xf]  ;;  %v4792_v14 = vld [vmem:[%s5890_s1 + $0xc] sm:$0xf] }
  0x22   : > { %v3598_v48 = vcombine.low %v606_v42, %v616_v43  ;;  %v409_v49 = vrot.slane %v408_v38, 4  ;;  %v865_v50 = vsel %vm667_vm0, %v3607_v39, 0  ;;  %v572_v51 = vrot.slane %v570_v40, 4  ;;  %v191_v39 = vld [vmem:[%s4466_s5 + $0x3c] sm:$0xf] }
  0x23   : > { %v419_v52 = vrot.slane %v418_v44, 4  ;;  %4010 = vmatpush3.bf16.xpose.msra.mxu1 %v865_v50  ;;  %v575_v53 = vrot.slane %v573_v41, 5  ;;  %v581_v54 = vrot.slane %v579_v46, 5  ;;  %v583_v55 = vshrl.u32 %v4500_v33, 16  ;;  %v4549_v44 = vld [vmem:[%s4466_s5 + $0x40] sm:$0xf] }
  0x24   : > { %4153 = vmatprep.subr.msk.bf16.mxu0 %vm667_vm0, %v3598_v48  ;;  %v414_v57 = vsel %vm4494_vm3, %v409_v49, %v413_v31  ;;  %v589_v58 = vshll.u32 %v4508_v45, 16  ;;  %v3614_v59 = vcombine.low %v209_v27, %v4500_v33  ;;  %v378_v60 = vshrl.u32 %v193_v47, 16  ;;  %v937_v4 = vld [vmem:[%s4466_s5 + $0x3c] sm:$0xe] }
  0x25   : > { %v424_v61 = vsel %vm4494_vm3, %v419_v52, %v423_v37  ;;  %v576_v62 = vor.u32 %v575_v53, %v572_v51  ;;  %v585_v63 = vrot.slane %v583_v55, 4  ;;  %v381_v5 = vshll.u32 %v193_v47, 16  ;;  %v4557_v53 = vld [vmem:[%s4466_s5 + $0x44] sm:$0x1] }
  0x26   : > { %v3590_v6 = vcombine.low %v414_v57, %v424_v61  ;;  %v591_v7 = vrot.slane %v589_v58, 5  ;;  %4162 = vmatprep.subr.msk.bf16.mxu1 %vm667_vm0, %v3614_v59  ;;  %v380_v8 = vrot.slane %v378_v60, 4  ;;  %v387_v9 = vshll.u32 %v4515_v56, 16 }
  0x27   : > { %v577_v10 = vrot.slane %v576_v62, 4  ;;  %v586_v12 = vor.u32 %v585_v63, %v581_v54  ;;  %v383_v15 = vrot.slane %v381_v5, 5  ;;  %v391_v16 = vshrl.u32 %v4515_v56, 16  ;;  %v205_v5 = vld [vmem:[%s4466_s5 + $0x90] sm:$0xf] }
  0x28   : > { %v693_v18 = vsel %vm667_vm0, %v3590_v6, 0  ;;  %v389_v19 = vrot.slane %v387_v9, 5  ;;  %v397_v20 = vshll.u32 %v4525_v2, 16  ;;  %v3606_v21 = vcombine.low %v193_v47, %v4515_v56 }
  0x29   : > { %3992 = vmatpush3.bf16.xpose.msra.mxu0 %v693_v18  ;;  %v582_v23 = vsel %vm4494_vm3, %v577_v10, %v581_v54  ;;  %v587_v24 = vrot.slane %v586_v12, 4  ;;  %v384_v25 = vor.u32 %v383_v15, %v380_v8  ;;  %v393_v26 = vrot.slane %v391_v16, 4  ;;  %v4567_v10 = vld [vmem:[%s4466_s5 + $0x94] sm:$0xf] }
  0x2a   : > { %v399_v27 = vrot.slane %v397_v20, 5  ;;  %v862_v29 = vsel %vm667_vm0, %v3606_v21, 0  ;;  %v546_v31 = vshrl.u32 %v207_v17, 16  ;;  %v549_v34 = vshll.u32 %v207_v17, 16  ;;  %v4574_v21 = vld [vmem:[%s4466_s5 + $0x98] sm:$0x1] }
  0x2b   : > { %v592_v35 = vsel %vm4494_vm3, %v587_v24, %v591_v7  ;;  %v385_v36 = vrot.slane %v384_v25, 4  ;;  %v394_v37 = vor.u32 %v393_v26, %v389_v19  ;;  %4012 = vmatpush3.bf16.xpose.msra.mxu1 %v862_v29  ;;  %v555_v38 = vshll.u32 %v4535_v22, 16  ;;  %v189_v29 = vld [vmem:[%s4466_s5 + $0x30] sm:$0xf] }
  0x2c   : > { %v3597_v40 = vcombine.low %v582_v23, %v592_v35  ;;  %v548_v41 = vrot.slane %v546_v31, 4  ;;  %v551_v42 = vrot.slane %v549_v34, 5  ;;  %v559_v43 = vshrl.u32 %v4535_v22, 16 }
  0x2d   : > { %v390_v46 = vsel %vm4494_vm3, %v385_v36, %v389_v19  ;;  %v395_v47 = vrot.slane %v394_v37, 4  ;;  %v557_v48 = vrot.slane %v555_v38, 5  ;;  %v565_v49 = vshll.u32 %v4541_v30, 16 }
  0x2e   : > { %4154 = vmatprep.subr.msk.bf16.mxu0 %vm667_vm0, %v3597_v40  ;;  %v552_v50 = vor.u32 %v551_v42, %v548_v41  ;;  %v561_v51 = vrot.slane %v559_v43, 4  ;;  %v3613_v52 = vcombine.low %v207_v17, %v4535_v22  ;;  %v354_v54 = vshrl.u32 %v191_v39, 16  ;;  %v4584_v41 = vld [vmem:[%s4466_s5 + $0x34] sm:$0xf] }
  0x2f   : > { %v400_v55 = vsel %vm4494_vm3, %v395_v47, %v399_v27  ;;  %v567_v57 = vrot.slane %v565_v49, 5  ;;  %v357_v58 = vshll.u32 %v191_v39, 16  ;;  %v363_v59 = vshll.u32 %v4549_v44, 16 }
  0x30   : > { %v3589_v60 = vcombine.low %v390_v46, %v400_v55  ;;  %v553_v61 = vrot.slane %v552_v50, 4  ;;  %v562_v62 = vor.u32 %v561_v51, %v557_v48  ;;  %4163 = vmatprep.subr.msk.bf16.mxu1 %vm667_vm0, %v3613_v52  ;;  %v356_v63 = vrot.slane %v354_v54, 4  ;;  %v4591_v51 = vld [vmem:[%s4466_s5 + $0x38] sm:$0x1] }
  0x31   : > { %v359_v6 = vrot.slane %v357_v58, 5  ;;  %v365_v7 = vrot.slane %v363_v59, 5  ;;  %v367_v8 = vshrl.u32 %v4549_v44, 16  ;;  %v373_v9 = vshll.u32 %v4557_v53, 16  ;;  %v203_v59 = vld [vmem:[%s4466_s5 + $0x84] sm:$0xf] }
  0x32   : > { %v690_v12 = vsel %vm667_vm0, %v3589_v60, 0  ;;  %v558_v15 = vsel %vm4494_vm3, %v553_v61, %v557_v48  ;;  %v563_v16 = vrot.slane %v562_v62, 4  ;;  %v3605_v17 = vcombine.low %v191_v39, %v4549_v44 }
  0x33   : > { %3994 = vmatpush3.bf16.xpose.msra.mxu0 %v690_v12  ;;  %v360_v18 = vor.u32 %v359_v6, %v356_v63  ;;  %v369_v19 = vrot.slane %v367_v8, 4  ;;  %v375_v20 = vrot.slane %v373_v9, 5  ;;  %v522_v23 = vshrl.u32 %v205_v5, 16  ;;  %v4605_v12 = vld [vmem:[%s4466_s5 + $0x8c] sm:$0x1] }
  0x34   : > { %v568_v24 = vsel %vm4494_vm3, %v563_v16, %v567_v57  ;;  %v859_v25 = vsel %vm667_vm0, %v3605_v17, 0  ;;  %v525_v26 = vshll.u32 %v205_v5, 16  ;;  %v531_v27 = vshll.u32 %v4567_v10, 16 }
  0x35   : > { %v3596_v31 = vcombine.low %v558_v15, %v568_v24  ;;  %v361_v34 = vrot.slane %v360_v18, 4  ;;  %v370_v35 = vor.u32 %v369_v19, %v365_v7  ;;  %4014 = vmatpush3.bf16.xpose.msra.mxu1 %v859_v25  ;;  %v524_v36 = vrot.slane %v522_v23, 4  ;;  %v187_v25 = vld [vmem:[%s4466_s5 + $0x24] sm:$0xf] }
  0x36   : > { %v527_v37 = vrot.slane %v525_v26, 5  ;;  %v533_v38 = vrot.slane %v531_v27, 5  ;;  %v535_v39 = vshrl.u32 %v4567_v10, 16  ;;  %v541_v40 = vshll.u32 %v4574_v21, 16 }
  0x37   : > { %4155 = vmatprep.subr.msk.bf16.mxu0 %vm667_vm0, %v3596_v31  ;;  %v366_v42 = vsel %vm4494_vm3, %v361_v34, %v365_v7  ;;  %v371_v43 = vrot.slane %v370_v35, 4  ;;  %v3612_v46 = vcombine.low %v205_v5, %v4567_v10  ;;  %v330_v47 = vshrl.u32 %v189_v29, 16  ;;  %v4600_v5 = vld [vmem:[%s4466_s5 + $0x88] sm:$0xf] }
  0x38   : > { %v528_v48 = vor.u32 %v527_v37, %v524_v36  ;;  %v537_v49 = vrot.slane %v535_v39, 4  ;;  %v543_v50 = vrot.slane %v541_v40, 5  ;;  %v333_v52 = vshll.u32 %v189_v29, 16  ;;  %v4616_v34 = vld [vmem:[%s4466_s5 + $0x28] sm:$0xf] }
  0x39   : > { %v376_v54 = vsel %vm4494_vm3, %v371_v43, %v375_v20  ;;  %4164 = vmatprep.subr.msk.bf16.mxu1 %vm667_vm0, %v3612_v46  ;;  %v332_v55 = vrot.slane %v330_v47, 4  ;;  %v339_v57 = vshll.u32 %v4584_v41, 16  ;;  %v343_v58 = vshrl.u32 %v4584_v41, 16  ;;  %v4620_v39 = vld [vmem:[%s4466_s5 + $0x2c] sm:$0x1] }
  0x3a   : > { %v3588_v60 = vcombine.low %v366_v42, %v376_v54  ;;  %v529_v61 = vrot.slane %v528_v48, 4  ;;  %v538_v62 = vor.u32 %v537_v49, %v533_v38  ;;  %v335_v63 = vrot.slane %v333_v52, 5 }
  0x3b   : > { %v341_v6 = vrot.slane %v339_v57, 5  ;;  %v345_v7 = vrot.slane %v343_v58, 4  ;;  %v349_v8 = vshll.u32 %v4591_v51, 16  ;;  %v3604_v9 = vcombine.low %v189_v29, %v4584_v41  ;;  %v201_v58 = vld [vmem:[%s4466_s5 + $0x78] sm:$0xf] }
  0x3c   : > { %v687_v15 = vsel %vm667_vm0, %v3588_v60, 0  ;;  %v534_v16 = vsel %vm4494_vm3, %v529_v61, %v533_v38  ;;  %v539_v17 = vrot.slane %v538_v62, 4  ;;  %v336_v18 = vor.u32 %v335_v63, %v332_v55 }
  0x3d   : > { %3996 = vmatpush3.bf16.xpose.msra.mxu0 %v687_v15  ;;  %v346_v19 = vor.u32 %v345_v7, %v341_v6  ;;  %v351_v20 = vrot.slane %v349_v8, 5  ;;  %v856_v23 = vsel %vm667_vm0, %v3604_v9, 0  ;;  %v498_v24 = vshrl.u32 %v203_v59, 16  ;;  %v4639_v15 = vld [vmem:[%s4466_s5 + $0x80] sm:$0x1] }
  0x3e   : > { %v544_v26 = vsel %vm4494_vm3, %v539_v17, %v543_v50  ;;  %v337_v27 = vrot.slane %v336_v18, 4  ;;  %4016 = vmatpush3.bf16.xpose.msra.mxu1 %v856_v23  ;;  %v501_v29 = vshll.u32 %v203_v59, 16  ;;  %v507_v31 = vshll.u32 %v4600_v5, 16 }
  0x3f   : > { %v3595_v35 = vcombine.low %v534_v16, %v544_v26  ;;  %v347_v36 = vrot.slane %v346_v19, 4  ;;  %v500_v37 = vrot.slane %v498_v24, 4  ;;  %v511_v38 = vshrl.u32 %v4600_v5, 16 }
  0x40   : > { %v342_v40 = vsel %vm4494_vm3, %v337_v27, %v341_v6  ;;  %v503_v42 = vrot.slane %v501_v29, 5  ;;  %v509_v43 = vrot.slane %v507_v31, 5  ;;  %v517_v46 = vshll.u32 %v4605_v12, 16  ;;  %v4634_v6 = vld [vmem:[%s4466_s5 + $0x7c] sm:$0xf] }
  0x41   : > { %4156 = vmatprep.subr.msk.bf16.mxu0 %vm667_vm0, %v3595_v35  ;;  %v352_v47 = vsel %vm4494_vm3, %v347_v36, %v351_v20  ;;  %v513_v48 = vrot.slane %v511_v38, 4  ;;  %v3611_v49 = vcombine.low %v203_v59, %v4600_v5  ;;  %v306_v50 = vshrl.u32 %v187_v25, 16  ;;  %v185_v27 = vld [vmem:[%s4466_s5 + $0x18] sm:$0xf] }
  0x42   : > { %v3587_v52 = vcombine.low %v342_v40, %v352_v47  ;;  %v504_v54 = vor.u32 %v503_v42, %v500_v37  ;;  %v519_v55 = vrot.slane %v517_v46, 5  ;;  %v309_v57 = vshll.u32 %v187_v25, 16  ;;  %v4649_v37 = vld [vmem:[%s4466_s5 + $0x1c] sm:$0xf] }
  0x43   : > { %v514_v60 = vor.u32 %v513_v48, %v509_v43  ;;  %4165 = vmatprep.subr.msk.bf16.mxu1 %vm667_vm0, %v3611_v49  ;;  %v308_v61 = vrot.slane %v306_v50, 4  ;;  %v315_v62 = vshll.u32 %v4616_v34, 16  ;;  %v319_v63 = vshrl.u32 %v4616_v34, 16 }
  0x44   : > { %v684_v59 = vsel %vm667_vm0, %v3587_v52, 0  ;;  %v505_v7 = vrot.slane %v504_v54, 4  ;;  %v311_v8 = vrot.slane %v309_v57, 5  ;;  %v325_v9 = vshll.u32 %v4620_v39, 16  ;;  %v4659_v54 = vld [vmem:[%s4466_s5 + $0x20] sm:$0x1] }
  0x45   : > { %3998 = vmatpush3.bf16.xpose.msra.mxu0 %v684_v59  ;;  %v515_v16 = vrot.slane %v514_v60, 4  ;;  %v317_v17 = vrot.slane %v315_v62, 5  ;;  %v321_v18 = vrot.slane %v319_v63, 4  ;;  %v3603_v19 = vcombine.low %v187_v25, %v4616_v34  ;;  %v199_v63 = vld [vmem:[%s4466_s5 + $0x6c] sm:$0xf] }
  0x46   : > { %v510_v20 = vsel %vm4494_vm3, %v505_v7, %v509_v43  ;;  %v312_v23 = vor.u32 %v311_v8, %v308_v61  ;;  %v327_v24 = vrot.slane %v325_v9, 5  ;;  %v474_v26 = vshrl.u32 %v201_v58, 16 }
  0x47   : > { %v520_v29 = vsel %vm4494_vm3, %v515_v16, %v519_v55  ;;  %v322_v31 = vor.u32 %v321_v18, %v317_v17  ;;  %v853_v35 = vsel %vm667_vm0, %v3603_v19, 0  ;;  %v477_v36 = vshll.u32 %v201_v58, 16  ;;  %v4667_v16 = vld [vmem:[%s4466_s5 + $0x70] sm:$0xf] }
  0x48   : > { %v3594_v38 = vcombine.low %v510_v20, %v520_v29  ;;  %v313_v40 = vrot.slane %v312_v23, 4  ;;  %4018 = vmatpush3.bf16.xpose.msra.mxu1 %v853_v35  ;;  %v476_v25 = vrot.slane %v474_v26, 4  ;;  %v483_v42 = vshll.u32 %v4634_v6, 16 }
  0x49   : > { %v323_v43 = vrot.slane %v322_v31, 4  ;;  %v479_v46 = vrot.slane %v477_v36, 5  ;;  %v487_v47 = vshrl.u32 %v4634_v6, 16  ;;  %v493_v48 = vshll.u32 %v4639_v15, 16 }
  0x4a   : > { %4157 = vmatprep.subr.msk.bf16.mxu0 %vm667_vm0, %v3594_v38  ;;  %v318_v49 = vsel %vm4494_vm3, %v313_v40, %v317_v17  ;;  %v485_v50 = vrot.slane %v483_v42, 5  ;;  %v3610_v52 = vcombine.low %v201_v58, %v4634_v6  ;;  %v282_v55 = vshrl.u32 %v185_v27, 16  ;;  %v4676_v38 = vld [vmem:[%s4466_s5 + $0x74] sm:$0x1] }
  0x4b   : > { %v328_v57 = vsel %vm4494_vm3, %v323_v43, %v327_v24  ;;  %v480_v60 = vor.u32 %v479_v46, %v476_v25  ;;  %v489_v61 = vrot.slane %v487_v47, 4  ;;  %v495_v62 = vrot.slane %v493_v48, 5  ;;  %v183_v46 = vld [vmem:[%s4466_s5 + $0xc] sm:$0xf] }
  0x4c   : > { %v3586_v59 = vcombine.low %v318_v49, %v328_v57  ;;  %4166 = vmatprep.subr.msk.bf16.mxu1 %vm667_vm0, %v3610_v52  ;;  %v284_v7 = vrot.slane %v282_v55, 4  ;;  %v285_v8 = vshll.u32 %v185_v27, 16  ;;  %v291_v9 = vshll.u32 %v4649_v37, 16 }
  0x4d   : > { %v481_v58 = vrot.slane %v480_v60, 4  ;;  %v490_v17 = vor.u32 %v489_v61, %v485_v50  ;;  %v295_v18 = vshrl.u32 %v4649_v37, 16  ;;  %v301_v19 = vshll.u32 %v4659_v54, 16 }
  0x4e   : > { %v681_v20 = vsel %vm667_vm0, %v3586_v59, 0  ;;  %v287_v23 = vrot.slane %v285_v8, 5  ;;  %v293_v24 = vrot.slane %v291_v9, 5  ;;  %v3602_v26 = vcombine.low %v185_v27, %v4649_v37 }
  0x4f   : > { %4000 = vmatpush3.bf16.xpose.msra.mxu0 %v681_v20  ;;  %v486_v29 = vsel %vm4494_vm3, %v481_v58, %v485_v50  ;;  %v491_v31 = vrot.slane %v490_v17, 4  ;;  %v297_v35 = vrot.slane %v295_v18, 4  ;;  %v303_v36 = vrot.slane %v301_v19, 5  ;;  %v4685_v50 = vld [vmem:[%s4466_s5 + $0x10] sm:$0xf] }
  0x50   : > { %v288_v40 = vor.u32 %v287_v23, %v284_v7  ;;  %v850_v25 = vsel %vm667_vm0, %v3602_v26, 0  ;;  %v450_v42 = vshrl.u32 %v199_v63, 16  ;;  %v453_v43 = vshll.u32 %v199_v63, 16  ;;  %v4693_v17 = vld [vmem:[%s4466_s5 + $0x14] sm:$0x1] }
  0x51   : > { %v496_v47 = vsel %vm4494_vm3, %v491_v31, %v495_v62  ;;  %v298_v27 = vor.u32 %v297_v35, %v293_v24  ;;  %4020 = vmatpush3.bf16.xpose.msra.mxu1 %v850_v25  ;;  %v459_v48 = vshll.u32 %v4667_v16, 16  ;;  %v463_v49 = vshrl.u32 %v4667_v16, 16 }
  0x52   : > { %v3593_v52 = vcombine.low %v486_v29, %v496_v47  ;;  %v289_v55 = vrot.slane %v288_v40, 4  ;;  %v452_v57 = vrot.slane %v450_v42, 4  ;;  %v455_v60 = vrot.slane %v453_v43, 5  ;;  %v197_v29 = vld [vmem:[%s4466_s5 + $0x60] sm:$0xf] }
  0x53   : > { %v299_v61 = vrot.slane %v298_v27, 4  ;;  %v461_v59 = vrot.slane %v459_v48, 5  ;;  %v465_v7 = vrot.slane %v463_v49, 4  ;;  %v469_v8 = vshll.u32 %v4676_v38, 16  ;;  %v4707_v49 = vld [vmem:[%s4466_s5 + $0x64] sm:$0xf] }
  0x54   : > { %4158 = vmatprep.subr.msk.bf16.mxu0 %vm667_vm0, %v3593_v52  ;;  %v294_v62 = vsel %vm4494_vm3, %v289_v55, %v293_v24  ;;  %v456_v9 = vor.u32 %v455_v60, %v452_v57  ;;  %v3609_v58 = vcombine.low %v199_v63, %v4667_v16  ;;  %v258_v18 = vshrl.u32 %v183_v46, 16  ;;  %v4710_v52 = vld [vmem:[%s4466_s5 + $0x68] sm:$0x1] }
  0x55   : > { %v304_v19 = vsel %vm4494_vm3, %v299_v61, %v303_v36  ;;  %v466_v20 = vor.u32 %v465_v7, %v461_v59  ;;  %v471_v23 = vrot.slane %v469_v8, 5  ;;  %v261_v26 = vshll.u32 %v183_v46, 16  ;;  %v181_v7 = vld [vmem:[%s4466_s5] sm:$0xf] }
  0x56   : > { %v3585_v31 = vcombine.low %v294_v62, %v304_v19  ;;  %v457_v35 = vrot.slane %v456_v9, 4  ;;  %4167 = vmatprep.subr.msk.bf16.mxu1 %vm667_vm0, %v3609_v58  ;;  %v260_v24 = vrot.slane %v258_v18, 4  ;;  %v267_v40 = vshll.u32 %v4685_v50, 16 }
  0x57   : > { %v467_v63 = vrot.slane %v466_v20, 4  ;;  %v263_v25 = vrot.slane %v261_v26, 5  ;;  %v271_v42 = vshrl.u32 %v4685_v50, 16  ;;  %v277_v36 = vshll.u32 %v4693_v17, 16 }
  0x58   : > { %v678_v43 = vsel %vm667_vm0, %v3585_v31, 0  ;;  %v462_v47 = vsel %vm4494_vm3, %v457_v35, %v461_v59  ;;  %v269_v27 = vrot.slane %v267_v40, 5  ;;  %v3601_v48 = vcombine.low %v183_v46, %v4685_v50  ;;  %v4722_v35 = vld [vmem:[%s4466_s5 + $0x4] sm:$0xf] }
  0x59   : > { %4002 = vmatpush3.bf16.xpose.msra.mxu0 %v678_v43  ;;  %v472_v55 = vsel %vm4494_vm3, %v467_v63, %v471_v23  ;;  %v264_v57 = vor.u32 %v263_v25, %v260_v24  ;;  %v273_v60 = vrot.slane %v271_v42, 4  ;;  %v279_v61 = vrot.slane %v277_v36, 5  ;;  %v4728_v43 = vld [vmem:[%s4466_s5 + $0x8] sm:$0x1] }
  0x5a   : > { %v3592_v8 = vcombine.low %v462_v47, %v472_v55  ;;  %v847_v59 = vsel %vm667_vm0, %v3601_v48, 0  ;;  %v426_v62 = vshrl.u32 %v197_v29, 16  ;;  %v429_v46 = vshll.u32 %v197_v29, 16 }
  0x5b   : > { %v265_v9 = vrot.slane %v264_v57, 4  ;;  %v274_v58 = vor.u32 %v273_v60, %v269_v27  ;;  %4022 = vmatpush3.bf16.xpose.msra.mxu1 %v847_v59  ;;  %v435_v18 = vshll.u32 %v4707_v49, 16  ;;  %v439_v19 = vshrl.u32 %v4707_v49, 16 }
  0x5c   : > { %4159 = vmatprep.subr.msk.bf16.mxu0 %vm667_vm0, %v3592_v8  ;;  %v428_v20 = vrot.slane %v426_v62, 4  ;;  %v431_v23 = vrot.slane %v429_v46, 5  ;;  %v445_v26 = vshll.u32 %v4710_v52, 16  ;;  %v3608_v31 = vcombine.low %v197_v29, %v4707_v49  ;;  %v947_v46 = vld [vmem:[%s4466_s5 + $0xb4] sm:$0xe] }
  0x5d   : > { %v270_v24 = vsel %vm4494_vm3, %v265_v9, %v269_v27  ;;  %v275_v40 = vrot.slane %v274_v58, 4  ;;  %v437_v63 = vrot.slane %v435_v18, 5  ;;  %v441_v25 = vrot.slane %v439_v19, 4 }
  0x5e   : > { %v432_v42 = vor.u32 %v431_v23, %v428_v20  ;;  %v447_v36 = vrot.slane %v445_v26, 5  ;;  %4168 = vmatprep.subr.msk.bf16.mxu1 %vm667_vm0, %v3608_v31  ;;  %v234_v47 = vshrl.u32 %v181_v7, 16  ;;  %v237_v48 = vshll.u32 %v181_v7, 16  ;;  %v4282_v20 = vld [vmem:[%s4466_s5 + $0x60] sm:$0xff]  }
  0x5f   : > { %v280_v29 = vsel %vm4494_vm3, %v275_v40, %v279_v61  ;;  %v442_v55 = vor.u32 %v441_v25, %v437_v63  ;;  %v243_v57 = vshll.u32 %v4722_v35, 16  ;;  %v247_v27 = vshrl.u32 %v4722_v35, 16  ;;  %v4281_v40 = vld [vmem:[%s4466_s5 + $0xc0] sm:$0xff]  }
  0x60   : > { %v3584_v60 = vcombine.low %v270_v24, %v280_v29  ;;  %v433_v8 = vrot.slane %v432_v42, 4  ;;  %v236_v59 = vrot.slane %v234_v47, 4  ;;  %v239_v62 = vrot.slane %v237_v48, 5  ;;  %v939_v24 = vld [vmem:[%s4466_s5 + $0x54] sm:$0xe] }
  0x61   : > { %v443_v9 = vrot.slane %v442_v55, 4  ;;  %v245_v58 = vrot.slane %v243_v57, 5  ;;  %v249_v18 = vrot.slane %v247_v27, 4  ;;  %v253_v19 = vshll.u32 %v4728_v43, 16 }
  0x62   : > { %v675_v61 = vsel %vm667_vm0, %v3584_v60, 0  ;;  %v438_v23 = vsel %vm4494_vm3, %v433_v8, %v437_v63  ;;  %v240_v26 = vor.u32 %v239_v62, %v236_v59  ;;  %v3600_v31 = vcombine.low %v181_v7, %v4722_v35  ;;  %v946_v63 = vld [vmem:[%s4466_s5 + $0xa8] sm:$0xe] }
  0x63   : > { %4004 = vmatpush3.bf16.xpose.msra.mxu0 %v675_v61  ;;  %v448_v25 = vsel %vm4494_vm3, %v443_v9, %v447_v36  ;;  %v250_v42 = vor.u32 %v249_v18, %v245_v58  ;;  %v255_v47 = vrot.slane %v253_v19, 5  ;;  %v3632_v29 = vrot.slane %v947_v46, 9  ;;  %v938_v62 = vld [vmem:[%s4466_s5 + $0x48] sm:$0xe] }
  0x64   : > { %v3591_v55 = vcombine.low %v438_v23, %v448_v25  ;;  %v241_v57 = vrot.slane %v240_v26, 4  ;;  %v844_v7 = vsel %vm667_vm0, %v3600_v31, 0  ;;  %v1090_v27 = vrot.slane %v4470_v3, 5  ;;  %v4284_v23 = vld [vmem:[%s4466_s5 + $0x54] sm:$0xff]  }
  0x65   : > { %v251_v60 = vrot.slane %v250_v42, 4  ;;  %4024 = vmatpush3.bf16.xpose.msra.mxu1 %v844_v7  ;;  %v3624_v36 = vrot.slane %v939_v24, 9  ;;  %v1034_v8 = vrot.slane %v4482_v13, 5  ;;  %v1379_v59 = vsel %vm667_vm0, %v4282_v20, 0 }
  0x66   : > { %4160 = vmatprep.subr.msk.bf16.mxu0 %vm667_vm0, %v3591_v55  ;;  %v246_v46 = vsel %vm4494_vm3, %v241_v57, %v245_v58  ;;  %v1091_v9 = vsel %vm4747_vm6, %v3632_v29, %v1090_v27  ;;  %v1092_v18 = vrot.slane %v1090_v27, 4  ;;  %4177 = vmatprep.subr.msk.bf16.mxu1 %vm667_vm0, %v4281_v40  ;;  %v3631_v3 = vrot.slane %v946_v63, 9  ;;  %v945_v40 = vld [vmem:[%s4466_s5 + $0x9c] sm:$0xe]  ;;  %v4283_v29 = vld [vmem:[%s4466_s5 + $0xb4] sm:$0xff]   ;;  %v4286_v57 = vld [vmem:[%s4466_s5 + $0x48] sm:$0xff]  }
  0x67   : > { %v256_v13 = vsel %vm4494_vm3, %v251_v60, %v255_v47  ;;  %v1035_v19 = vsel %vm4747_vm6, %v3624_v36, %v1034_v8  ;;  %v1036_v20 = vrot.slane %v1034_v8, 4  ;;  %v1083_v61 = vrot.slane %v4500_v33, 5 }
  0x68   : > { %v3583_v58 = vcombine.low %v246_v46, %v256_v13  ;;  %v1094_v26 = vsel %vm4747_vm6, %v1092_v18, %v1093_v11  ;;  %v1086_v31 = vrot.slane %v4508_v45, 5  ;;  %v3623_v24 = vrot.slane %v938_v62, 9  ;;  %v944_v62 = vld [vmem:[%s4466_s5 + $0x90] sm:$0xe] }
  0x69   : > { %v3649_v25 = vcombine.low %v1091_v9, %v1094_v26  ;;  %v1038_v42 = vsel %vm4747_vm6, %v1036_v20, %v1037_v32  ;;  %v4781_v33 = vsel %vm4747_vm6, %v3631_v3, %v1083_v61  ;;  %v1085_v47 = vrot.slane %v1083_v61, 4 }
  0x6a   : > { %v672_v63 = vsel %vm667_vm0, %v3583_v58, 0  ;;  %v3641_v11 = vcombine.low %v1035_v19, %v1038_v42  ;;  %v1027_v45 = vrot.slane %v4515_v56, 5  ;;  %v1030_v55 = vrot.slane %v4525_v2, 5  ;;  %v936_v19 = vld [vmem:[%s4466_s5 + $0x30] sm:$0xe] }
  0x6b   : > { %4006 = vmatpush3.bf16.xpose.msra.mxu0 %v672_v63  ;;  %v1087_v32 = vsel %vm4747_vm6, %v1085_v47, %v1086_v31  ;;  %v1376_v7 = vsel %vm667_vm0, %v4284_v23, 0  ;;  %v3630_v27 = vrot.slane %v945_v40, 9  ;;  %v1076_v60 = vrot.slane %v4535_v22, 5  ;;  %v4837_v40 = vld [vmem:[%s5890_s1 + $0x8] sm:$0xf] }
  0x6c   : > { %4026 = vmatmul.mubr.msk.bf16.vlgmr.msra.gmra.mxu1 %vm667_vm0, %v4453_v1  ;;  %4169 = vmatprep.subr.msk.bf16.mxu0 %vm667_vm0, %v3649_v25  ;;  %v1170_v56 = vsel %vm667_vm0, %v3641_v11, 0  ;;  %v3648_v2 = vcombine.low %v4781_v33, %v1087_v32  ;;  %v1028_v36 = vsel %vm4747_vm6, %v3623_v24, %v1027_v45  ;;  %v1029_v8 = vrot.slane %v1027_v45, 4  ;;  %v943_v24 = vld [vmem:[%s4466_s5 + $0x84] sm:$0xe]  ;;  %v4290_v45 = vld [vmem:[%s4466_s5 + $0x30] sm:$0xff]  }
  0x6d   : > { %4046 = vmatpush3.bf16.xpose.msra.mxu1 %v1379_v59  ;;  %v4808_v22 = vsel %vm4747_vm6, %v3630_v27, %v1076_v60  ;;  %v1078_v46 = vrot.slane %v1076_v60, 4  ;;  %v1079_v1 = vrot.slane %v4541_v30, 5  ;;  %v3622_v9 = vrot.slane %v937_v4, 9  ;;  %4061 = vmatprep.mubr.msk.bf16.mxu1 %vm667_vm0, %v4792_v14  ;;  %v4288_v30 = vld [vmem:[%s4466_s5 + $0x3c] sm:$0xff]   ;;  %v935_v11 = vld [vmem:[%s4466_s5 + $0x24] sm:$0xe] }
  0x6e   : > { %v1031_v18 = vsel %vm4747_vm6, %v1029_v8, %v1030_v55  ;;  %4178 = vmatprep.subr.msk.bf16.mxu1 %vm667_vm0, %v4283_v29  ;;  %v1020_v3 = vrot.slane %v4549_v44, 5  ;;  %v1023_v59 = vrot.slane %v4557_v53, 5  ;;  %v4819_v13 = vsel %vm667_vm0, %v4286_v57, 0 }
  0x6f   : > { %v3640_v20 = vcombine.low %v1028_v36, %v1031_v18  ;;  %v4825_v61 = vsel %vm4747_vm6, %v1078_v46, %v1079_v1  ;;  %v3629_v23 = vrot.slane %v944_v62, 9  ;;  %v1069_v58 = vrot.slane %v4567_v10, 5  ;;  %v4285_v10 = vld [vmem:[%s4466_s5 + $0xa8] sm:$0xff]   ;;  %v934_v1 = vld [vmem:[%s4466_s5 + $0x18] sm:$0xe] }
  0x70   : > { %v3647_v26 = vcombine.low %v4808_v22, %v4825_v61  ;;  %v1021_v44 = vsel %vm4747_vm6, %v3622_v9, %v1020_v3  ;;  %v1022_v53 = vrot.slane %v1020_v3, 4  ;;  %v1072_v31 = vrot.slane %v4574_v21, 5  ;;  %v4292_v9 = vld [vmem:[%s4466_s5 + $0x24] sm:$0xff]  }
  0x71   : > { %v1167_v25 = vsel %vm667_vm0, %v3640_v20, 0  ;;  %v4843_v42 = vsel %vm4747_vm6, %v3629_v23, %v1069_v58  ;;  %v1071_v33 = vrot.slane %v1069_v58, 4  ;;  %v3621_v47 = vrot.slane %v936_v19, 9  ;;  %v941_v23 = vld [vmem:[%s4466_s5 + $0x6c] sm:$0xe] }
  0x72   : > { %4008 = vmatmul.mubr.msk.bf16.vlgmr.msra.gmra.mxu0 %vm667_vm0, %v4448_v0  ;;  %v1024_v21 = vsel %vm4747_vm6, %v1022_v53, %v1023_v59  ;;  %v1013_v29 = vrot.slane %v4584_v41, 5  ;;  %v1016_v4 = vrot.slane %v4591_v51, 5  ;;  %v4852_v63 = vsel %vm667_vm0, %v4288_v30, 0 }
  0x73   : > { %4028 = vmatpush3.bf16.xpose.msra.mxu0 %v1170_v56  ;;  %v3639_v55 = vcombine.low %v1021_v44, %v1024_v21  ;;  %v4858_v57 = vsel %vm4747_vm6, %v1071_v33, %v1072_v31  ;;  %v3628_v0 = vrot.slane %v943_v24, 9  ;;  %v1062_v32 = vrot.slane %v4600_v5, 5  ;;  %4043 = vmatprep.mubr.msk.bf16.mxu0 %vm667_vm0, %v4837_v40  ;;  %v942_v56 = vld [vmem:[%s4466_s5 + $0x78] sm:$0xe]  ;;  %v4287_v44 = vld [vmem:[%s4466_s5 + $0x9c] sm:$0xff]  }
  0x74   : > { %4170 = vmatprep.subr.msk.bf16.mxu0 %vm667_vm0, %v3648_v2  ;;  %v3646_v41 = vcombine.low %v4843_v42, %v4858_v57  ;;  %v1014_v51 = vsel %vm4747_vm6, %v3621_v47, %v1013_v29  ;;  %v1015_v27 = vrot.slane %v1013_v29, 4  ;;  %v1065_v60 = vrot.slane %v4605_v12, 5  ;;  %v933_v47 = vld [vmem:[%s4466_s5 + $0xc] sm:$0xe]  ;;  %v4294_v21 = vld [vmem:[%s4466_s5 + $0x18] sm:$0xff]  }
  0x75   : > { %4048 = vmatpush3.bf16.xpose.msra.mxu1 %v1376_v7  ;;  %v4871_v5 = vsel %vm667_vm0, %v3639_v55, 0  ;;  %v4875_v36 = vsel %vm4747_vm6, %v3628_v0, %v1062_v32  ;;  %v1064_v2 = vrot.slane %v1062_v32, 4  ;;  %v3620_v8 = vrot.slane %v935_v11, 9  ;;  %v940_v0 = vld [vmem:[%s4466_s5 + $0x60] sm:$0xe] }
  0x76   : > { %4179 = vmatprep.subr.msk.bf16.mxu1 %vm667_vm0, %v4285_v10  ;;  %v1017_v62 = vsel %vm4747_vm6, %v1015_v27, %v1016_v4  ;;  %v1006_v12 = vrot.slane %v4616_v34, 5  ;;  %v1009_v7 = vrot.slane %v4620_v39, 5  ;;  %v4883_v46 = vsel %vm667_vm0, %v4290_v45, 0  ;;  %v932_v27 = vld [vmem:[%s4466_s5] sm:$0xe] }
  0x77   : > { %v3638_v18 = vcombine.low %v1014_v51, %v1017_v62  ;;  %v4889_v3 = vsel %vm4747_vm6, %v1064_v2, %v1065_v60  ;;  %v3627_v59 = vrot.slane %v942_v56, 9  ;;  %v1055_v19 = vrot.slane %v4634_v6, 5  ;;  %v4296_v60 = vld [vmem:[%s4466_s5 + $0xc] sm:$0xff]  }
  0x78   : > { %v3645_v34 = vcombine.low %v4875_v36, %v4889_v3  ;;  %v1007_v39 = vsel %vm4747_vm6, %v3620_v8, %v1006_v12  ;;  %v1008_v30 = vrot.slane %v1006_v12, 4  ;;  %v1058_v20 = vrot.slane %v4639_v15, 5 }
  0x79   : > { %v4899_v58 = vsel %vm667_vm0, %v3638_v18, 0  ;;  %v4904_v53 = vsel %vm4747_vm6, %v3627_v59, %v1055_v19  ;;  %v1057_v6 = vrot.slane %v1055_v19, 4  ;;  %v3619_v31 = vrot.slane %v934_v1, 9  ;;  %v3746_v1 = vld [vmem:[%s4466_s5 + $0xc0] sm:$0xf] }
  0x7a   : > { %v1010_v24 = vsel %vm4747_vm6, %v1008_v30, %v1009_v7  ;;  %v999_v10 = vrot.slane %v4649_v37, 5  ;;  %v1002_v33 = vrot.slane %v4659_v54, 5  ;;  %v4911_v15 = vsel %vm667_vm0, %v4292_v9, 0  ;;  %v4967_v19 = vld [vmem:[%s4466_s5 + $0xc4] sm:$0xf] }
  0x7b   : > { %4030 = vmatpush3.bf16.xpose.msra.mxu0 %v1167_v25  ;;  %v3637_v29 = vcombine.low %v1007_v39, %v1010_v24  ;;  %v4917_v4 = vsel %vm4747_vm6, %v1057_v6, %v1058_v20  ;;  %v3626_v11 = vrot.slane %v941_v23, 9  ;;  %v1048_v45 = vrot.slane %v4667_v16, 5  ;;  %v4289_v39 = vld [vmem:[%s4466_s5 + $0x90] sm:$0xff]  }
  0x7c   : > { %4171 = vmatprep.subr.msk.bf16.mxu0 %vm667_vm0, %v3647_v26  ;;  %v3644_v37 = vcombine.low %v4904_v53, %v4917_v4  ;;  %v1000_v54 = vsel %vm4747_vm6, %v3619_v31, %v999_v10  ;;  %v1001_v25 = vrot.slane %v999_v10, 4  ;;  %v1051_v55 = vrot.slane %v4676_v38, 5  ;;  %v4983_v31 = vld [vmem:[%s4466_s5 + $0xc8] sm:$0x1] }
  0x7d   : > { %4050 = vmatpush3.bf16.xpose.msra.mxu1 %v4819_v13  ;;  %v4932_v16 = vsel %vm667_vm0, %v3637_v29, 0  ;;  %v4936_v22 = vsel %vm4747_vm6, %v3626_v11, %v1048_v45  ;;  %v1050_v61 = vrot.slane %v1048_v45, 4  ;;  %v3618_v26 = vrot.slane %v933_v47, 9 }
  0x7e   : > { %4180 = vmatprep.subr.msk.bf16.mxu1 %vm667_vm0, %v4287_v44  ;;  %v1003_v32 = vsel %vm4747_vm6, %v1001_v25, %v1002_v33  ;;  %v992_v38 = vrot.slane %v4685_v50, 5  ;;  %v995_v51 = vrot.slane %v4693_v17, 5  ;;  %v4944_v13 = vsel %vm667_vm0, %v4294_v21, 0  ;;  %v3722_v33 = vld [vmem:[%s4466_s5 + $0x60] sm:$0xf] }
  0x7f   : > { %v3636_v56 = vcombine.low %v1000_v54, %v1003_v32  ;;  %v4950_v2 = vsel %vm4747_vm6, %v1050_v61, %v1051_v55  ;;  %v3625_v8 = vrot.slane %v940_v0, 9  ;;  %v1041_v62 = vrot.slane %v4707_v49, 5  ;;  %v3724_v61 = vld [vmem:[%s4466_s5 + $0x68] sm:$0x1]  ;;  %v3782_v32 = vld [vmem:[%s4466_s5 + $0xc0] sm:$0xe] }
  0x80   : > { %v3643_v50 = vcombine.low %v4936_v22, %v4950_v2  ;;  %v993_v17 = vsel %vm4747_vm6, %v3618_v26, %v992_v38  ;;  %v994_v12 = vrot.slane %v992_v38, 4  ;;  %v1044_v7 = vrot.slane %v4710_v52, 5 }
  0x81   : > { %v4960_v9 = vsel %vm667_vm0, %v3636_v56, 0  ;;  %v4964_v18 = vsel %vm4747_vm6, %v3625_v8, %v1041_v62  ;;  %v1043_v49 = vrot.slane %v1041_v62, 4  ;;  %v3617_v59 = vrot.slane %v932_v27, 9  ;;  %v4291_v56 = vld [vmem:[%s4466_s5 + $0x84] sm:$0xff]  }
  0x82   : > { %v996_v30 = vsel %vm4747_vm6, %v994_v12, %v995_v51  ;;  %v985_v20 = vrot.slane %v4722_v35, 5  ;;  %v988_v52 = vrot.slane %v4728_v43, 5  ;;  %v4975_v23 = vsel %vm667_vm0, %v4296_v60, 0 }
  0x83   : > { %4032 = vmatpush3.bf16.xpose.msra.mxu0 %v4871_v5  ;;  %v3635_v44 = vcombine.low %v993_v17, %v996_v30  ;;  %v4980_v6 = vsel %vm4747_vm6, %v1043_v49, %v1044_v7  ;;  %v1857_v24 = vshrl.u32 %v3746_v1, 16  ;;  %v1860_v10 = vshll.u32 %v3746_v1, 16  ;;  %v3774_v7 = vld [vmem:[%s4466_s5 + $0x60] sm:$0xe] }
  0x84   : > { %4172 = vmatprep.subr.msk.bf16.mxu0 %vm667_vm0, %v3646_v41  ;;  %v3642_v35 = vcombine.low %v4964_v18, %v4980_v6  ;;  %v986_v43 = vsel %vm4747_vm6, %v3617_v59, %v985_v20  ;;  %v987_v5 = vrot.slane %v985_v20, 4  ;;  %v1866_v47 = vshll.u32 %v4967_v19, 16  ;;  %v3723_v41 = vld [vmem:[%s4466_s5 + $0x64] sm:$0xf]  ;;  %v3737_v6 = vld [vmem:[%s4466_s5 + $0x9c] sm:$0xf] }
  0x85   : > { %4052 = vmatpush3.bf16.xpose.msra.mxu1 %v4852_v63  ;;  %v4997_v21 = vsel %vm667_vm0, %v3635_v44, 0  ;;  %v1859_v29 = vrot.slane %v1857_v24, 4  ;;  %v1862_v42 = vrot.slane %v1860_v10, 5  ;;  %v1870_v57 = vshrl.u32 %v4967_v19, 16  ;;  %v3743_v24 = vld [vmem:[%s4466_s5 + $0xb4] sm:$0xf] }
  0x86   : > { %4181 = vmatprep.subr.msk.bf16.mxu1 %vm667_vm0, %v4289_v39  ;;  %v989_v11 = vsel %vm4747_vm6, %v987_v5, %v988_v52  ;;  %v1868_v45 = vrot.slane %v1866_v47, 5  ;;  %v1876_v54 = vshll.u32 %v4983_v31, 16  ;;  %v1665_v25 = vshrl.u32 %v3722_v33, 16 }
  0x87   : > { %v3634_v63 = vcombine.low %v986_v43, %v989_v11  ;;  %v1863_v55 = vor.u32 %v1862_v42, %v1859_v29  ;;  %v1872_v0 = vrot.slane %v1870_v57, 4  ;;  %v1668_v26 = vshll.u32 %v3722_v33, 16  ;;  %v3744_v42 = vld [vmem:[%s4466_s5 + $0xb8] sm:$0xf]  ;;  %v5040_v11 = vld [vmem:[%s4466_s5 + $0xbc] sm:$0x1] }
  0x88   : > { %v1878_v38 = vrot.slane %v1876_v54, 5  ;;  %v1667_v51 = vrot.slane %v1665_v25, 4  ;;  %v1674_v27 = vshll.u32 %v3723_v41, 16  ;;  %v1678_v60 = vshrl.u32 %v3723_v41, 16  ;;  %v3719_v25 = vld [vmem:[%s4466_s5 + $0x54] sm:$0xf] }
  0x89   : > { %v5009_v8 = vsel %vm667_vm0, %v3634_v63, 0  ;;  %v1864_v62 = vrot.slane %v1863_v55, 4  ;;  %v1873_v17 = vor.u32 %v1872_v0, %v1868_v45  ;;  %v1670_v12 = vrot.slane %v1668_v26, 5 }
  0x8a   : > { %v1676_v1 = vrot.slane %v1674_v27, 5  ;;  %v1680_v49 = vrot.slane %v1678_v60, 4  ;;  %v1684_v59 = vshll.u32 %v3724_v61, 16  ;;  %v3798_v39 = vrot.slane %v3782_v32, 9  ;;  %v5053_v27 = vld [vmem:[%s4466_s5 + $0x5c] sm:$0x1] }
  0x8b   : > { %4034 = vmatpush3.bf16.xpose.msra.mxu0 %v4899_v58  ;;  %v1869_v30 = vsel %vm4494_vm3, %v1864_v62, %v1868_v45  ;;  %v1874_v20 = vrot.slane %v1873_v17, 4  ;;  %v1671_v52 = vor.u32 %v1670_v12, %v1667_v51  ;;  %v2195_v44 = vrot.slane %v4967_v19, 5  ;;  %v3781_v60 = vld [vmem:[%s4466_s5 + $0xb4] sm:$0xe] }
  0x8c   : > { %4173 = vmatprep.subr.msk.bf16.mxu0 %vm667_vm0, %v3645_v34  ;;  %v1681_v10 = vor.u32 %v1680_v49, %v1676_v1  ;;  %v1686_v33 = vrot.slane %v1684_v59, 5  ;;  %v2198_v43 = vrot.slane %v4983_v31, 5  ;;  %v3790_v58 = vrot.slane %v3774_v7, 9 }
  0x8d   : > { %4054 = vmatpush3.bf16.xpose.msra.mxu1 %v4883_v46  ;;  %v1879_v5 = vsel %vm4494_vm3, %v1874_v20, %v1878_v38  ;;  %v1672_v19 = vrot.slane %v1671_v52, 4  ;;  %v5027_v47 = vsel %vm4747_vm6, %v3798_v39, %v2195_v44  ;;  %v2197_v36 = vrot.slane %v2195_v44, 4 }
  0x8e   : > { %4182 = vmatprep.subr.msk.bf16.mxu1 %vm667_vm0, %v4291_v56  ;;  %v5030_v3 = vcombine.low %v1869_v30, %v1879_v5  ;;  %v1682_v34 = vrot.slane %v1681_v10, 4  ;;  %v2139_v31 = vrot.slane %v3723_v41, 5  ;;  %v2142_v29 = vrot.slane %v3724_v61, 5  ;;  %v5050_v61 = vld [vmem:[%s4466_s5 + $0x58] sm:$0xf] }
  0x8f   : > { %v1677_v46 = vsel %vm4494_vm3, %v1672_v19, %v1676_v1  ;;  %v5037_v57 = vsel %vm4747_vm6, %v2197_v36, %v2198_v43  ;;  %v1833_v45 = vshrl.u32 %v3743_v24, 16  ;;  %v1836_v54 = vshll.u32 %v3743_v24, 16  ;;  %v4293_v56 = vld [vmem:[%s4466_s5 + $0x78] sm:$0xff]  }
  0x90   : > { %v1687_v41 = vsel %vm4494_vm3, %v1682_v34, %v1686_v33  ;;  %v3815_v63 = vcombine.low %v5027_v47, %v5037_v57  ;;  %v2140_v55 = vsel %vm4747_vm6, %v3790_v58, %v2139_v31  ;;  %v2141_v0 = vrot.slane %v2139_v31, 4  ;;  %v3773_v58 = vld [vmem:[%s4466_s5 + $0x54] sm:$0xe]  ;;  %v3740_v34 = vld [vmem:[%s4466_s5 + $0xa8] sm:$0xf] }
  0x91   : > { %v3757_v26 = vcombine.low %v1677_v46, %v1687_v41  ;;  %v1835_v32 = vrot.slane %v1833_v45, 4  ;;  %v1838_v38 = vrot.slane %v1836_v54, 5  ;;  %v1842_v51 = vshll.u32 %v3744_v42, 16  ;;  %v5082_v54 = vld [vmem:[%s4466_s5 + $0xac] sm:$0xf] }
  0x92   : > { %v2143_v62 = vsel %vm4747_vm6, %v2141_v0, %v2142_v29  ;;  %v1846_v17 = vshrl.u32 %v3744_v42, 16  ;;  %v1852_v12 = vshll.u32 %v5040_v11, 16  ;;  %v1641_v7 = vshrl.u32 %v3719_v25, 16 }
  0x93   : > { %4036 = vmatpush3.bf16.xpose.msra.mxu0 %v4932_v16  ;;  %v5062_v1 = vsel %vm667_vm0, %v3757_v26, 0  ;;  %v3807_v49 = vcombine.low %v2140_v55, %v2143_v62  ;;  %v1839_v59 = vor.u32 %v1838_v38, %v1835_v32  ;;  %v1844_v39 = vrot.slane %v1842_v51, 5  ;;  %v5089_v26 = vld [vmem:[%s4466_s5 + $0xb0] sm:$0x1] }
  0x94   : > { %4174 = vmatprep.subr.msk.bf16.mxu0 %vm667_vm0, %v3644_v37  ;;  %v1848_v30 = vrot.slane %v1846_v17, 4  ;;  %v1854_v20 = vrot.slane %v1852_v12, 5  ;;  %v1643_v52 = vrot.slane %v1641_v7, 4  ;;  %v1644_v44 = vshll.u32 %v3719_v25, 16  ;;  %v4295_v32 = vld [vmem:[%s4466_s5 + $0x6c] sm:$0xff]  }
  0x95   : > { %4056 = vmatpush3.bf16.xpose.msra.mxu1 %v4911_v15  ;;  %v5070_v16 = vsel %vm667_vm0, %v3807_v49, 0  ;;  %v1840_v24 = vrot.slane %v1839_v59, 4  ;;  %v1650_v10 = vshll.u32 %v5050_v61, 16  ;;  %v1654_v33 = vshrl.u32 %v5050_v61, 16  ;;  %v3716_v7 = vld [vmem:[%s4466_s5 + $0x48] sm:$0xf] }
  0x96   : > { %4183 = vmatprep.subr.msk.bf16.mxu1 %vm667_vm0, %v4293_v56  ;;  %v1849_v53 = vor.u32 %v1848_v30, %v1844_v39  ;;  %v1646_v4 = vrot.slane %v1644_v44, 5  ;;  %v1660_v37 = vshll.u32 %v5053_v27, 16  ;;  %v3797_v43 = vrot.slane %v3781_v60, 9 }
  0x97   : > { %v1845_v15 = vsel %vm4494_vm3, %v1840_v24, %v1844_v39  ;;  %v1652_v5 = vrot.slane %v1650_v10, 5  ;;  %v1656_v19 = vrot.slane %v1654_v33, 4  ;;  %v2188_v36 = vrot.slane %v3744_v42, 5 }
  0x98   : > { %v1850_v31 = vrot.slane %v1849_v53, 4  ;;  %v1647_v29 = vor.u32 %v1646_v4, %v1643_v52  ;;  %v1662_v46 = vrot.slane %v1660_v37, 5  ;;  %v2191_v45 = vrot.slane %v5040_v11, 5  ;;  %v5125_v52 = vld [vmem:[%s4466_s5 + $0x50] sm:$0x1] }
  0x99   : > { %v1657_v25 = vor.u32 %v1656_v19, %v1652_v5  ;;  %v5086_v41 = vsel %vm4747_vm6, %v3797_v43, %v2188_v36  ;;  %v2190_v55 = vrot.slane %v2188_v36, 4  ;;  %v3789_v0 = vrot.slane %v3773_v58, 9  ;;  %v3780_v53 = vld [vmem:[%s4466_s5 + $0xa8] sm:$0xe] }
  0x9a   : > { %v1855_v42 = vsel %vm4494_vm3, %v1850_v31, %v1854_v20  ;;  %v1648_v38 = vrot.slane %v1647_v29, 4  ;;  %v2132_v51 = vrot.slane %v5050_v61, 5  ;;  %v2135_v11 = vrot.slane %v5053_v27, 5 }
  0x9b   : > { %4038 = vmatpush3.bf16.xpose.msra.mxu0 %v4960_v9  ;;  %v5097_v60 = vcombine.low %v1845_v15, %v1855_v42  ;;  %v1658_v56 = vrot.slane %v1657_v25, 4  ;;  %v5101_v62 = vsel %vm4747_vm6, %v2190_v55, %v2191_v45  ;;  %v1809_v17 = vshrl.u32 %v3740_v34, 16 }
  0x9c   : > { %4175 = vmatprep.subr.msk.bf16.mxu0 %vm667_vm0, %v3643_v50  ;;  %v1653_v61 = vsel %vm4494_vm3, %v1648_v38, %v1652_v5  ;;  %v3814_v9 = vcombine.low %v5086_v41, %v5101_v62  ;;  %v2133_v27 = vsel %vm4747_vm6, %v3789_v0, %v2132_v51  ;;  %v2134_v12 = vrot.slane %v2132_v51, 4  ;;  %v3734_v62 = vld [vmem:[%s4466_s5 + $0x90] sm:$0xf] }
  0x9d   : > { %4058 = vmatpush3.bf16.xpose.msra.mxu1 %v4944_v13  ;;  %v1663_v22 = vsel %vm4494_vm3, %v1658_v56, %v1662_v46  ;;  %v1811_v2 = vrot.slane %v1809_v17, 4  ;;  %v1812_v50 = vshll.u32 %v3740_v34, 16  ;;  %v1818_v49 = vshll.u32 %v5082_v54, 16  ;;  %v3717_v13 = vld [vmem:[%s4466_s5 + $0x4c] sm:$0xf] }
  0x9e   : > { %4184 = vmatprep.subr.msk.bf16.mxu1 %vm667_vm0, %v4295_v32  ;;  %v3756_v59 = vcombine.low %v1653_v61, %v1663_v22  ;;  %v2136_v39 = vsel %vm4747_vm6, %v2134_v12, %v2135_v11  ;;  %v1822_v30 = vshrl.u32 %v5082_v54, 16  ;;  %v1828_v20 = vshll.u32 %v5089_v26, 16  ;;  %v3772_v34 = vld [vmem:[%s4466_s5 + $0x48] sm:$0xe]  ;;  %v5161_v12 = vld [vmem:[%s4466_s5 + $0xa4] sm:$0x1] }
  0x9f   : > { %v3806_v44 = vcombine.low %v2133_v27, %v2136_v39  ;;  %v1814_v24 = vrot.slane %v1812_v50, 5  ;;  %v1820_v10 = vrot.slane %v1818_v49, 5  ;;  %v1617_v33 = vshrl.u32 %v3716_v7, 16  ;;  %v5158_v27 = vld [vmem:[%s4466_s5 + $0xa0] sm:$0xf] }
  0xa0   : > { %v5129_v4 = vsel %vm667_vm0, %v3756_v59, 0  ;;  %v1824_v37 = vrot.slane %v1822_v30, 4  ;;  %v1830_v43 = vrot.slane %v1828_v20, 5  ;;  %v1620_v58 = vshll.u32 %v3716_v7, 16  ;;  %v5176_v59 = vld [vmem:[%s4466_s5 + $0x40] sm:$0xf] }
  0xa1   : > { %v5132_v15 = vsel %vm667_vm0, %v3806_v44, 0  ;;  %v1815_v5 = vor.u32 %v1814_v24, %v1811_v2  ;;  %v1619_v19 = vrot.slane %v1617_v33, 4  ;;  %v1626_v36 = vshll.u32 %v3717_v13, 16  ;;  %v5188_v33 = vld [vmem:[%s5890_s1 + $0x14] sm:$0xf] }
  0xa2   : > { %v1825_v31 = vor.u32 %v1824_v37, %v1820_v10  ;;  %v1622_v29 = vrot.slane %v1620_v58, 5  ;;  %v1630_v46 = vshrl.u32 %v3717_v13, 16  ;;  %v1636_v45 = vshll.u32 %v5125_v52, 16 }
  0xa3   : > { %4040 = vmatpush3.bf16.xpose.msra.mxu0 %v4997_v21  ;;  %v1816_v25 = vrot.slane %v1815_v5, 4  ;;  %v1628_v55 = vrot.slane %v1626_v36, 5  ;;  %v3796_v0 = vrot.slane %v3780_v53, 9  ;;  %v2181_v32 = vrot.slane %v5082_v54, 5 }
  0xa4   : > { %4176 = vmatprep.subr.msk.bf16.mxu0 %vm667_vm0, %v3642_v35  ;;  %v1826_v42 = vrot.slane %v1825_v31, 4  ;;  %v1623_v38 = vor.u32 %v1622_v29, %v1619_v19  ;;  %v1632_v51 = vrot.slane %v1630_v46, 4  ;;  %v1638_v11 = vrot.slane %v1636_v45, 5  ;;  %v3779_v45 = vld [vmem:[%s4466_s5 + $0x9c] sm:$0xe] }
  0xa5   : > { %4060 = vmatpush3.bf16.xpose.msra.mxu1 %v4975_v23  ;;  %v1821_v21 = vsel %vm4494_vm3, %v1816_v25, %v1820_v10  ;;  %v5147_v54 = vsel %vm4747_vm6, %v3796_v0, %v2181_v32  ;;  %v2183_v56 = vrot.slane %v2181_v32, 4  ;;  %v2184_v18 = vrot.slane %v5089_v26, 5  ;;  %v3771_v0 = vld [vmem:[%s4466_s5 + $0x3c] sm:$0xe]  ;;  %v5220_v32 = vld [vmem:[%s5890_s1 + $0x10] sm:$0xf] }
  0xa6   : > { %4193 = vmatprep.subr.msk.bf16.mxu1 %vm667_vm0, %v3815_v63  ;;  %v1831_v23 = vsel %vm4494_vm3, %v1826_v42, %v1830_v43  ;;  %v1624_v35 = vrot.slane %v1623_v38, 4  ;;  %v1633_v17 = vor.u32 %v1632_v51, %v1628_v55  ;;  %v3788_v61 = vrot.slane %v3772_v34, 9  ;;  %v3713_v63 = vld [vmem:[%s4466_s5 + $0x3c] sm:$0xf]  ;;  %v5198_v34 = vld [vmem:[%s4466_s5 + $0x44] sm:$0x1] }
  0xa7   : > { %v5163_v7 = vcombine.low %v1821_v21, %v1831_v23  ;;  %v5167_v26 = vsel %vm4747_vm6, %v2183_v56, %v2184_v18  ;;  %v2125_v47 = vrot.slane %v3717_v13, 5  ;;  %v2128_v57 = vrot.slane %v5125_v52, 5 }
  0xa8   : > { %v1629_v22 = vsel %vm4494_vm3, %v1624_v35, %v1628_v55  ;;  %v1634_v2 = vrot.slane %v1633_v17, 4  ;;  %v3813_v50 = vcombine.low %v5147_v54, %v5167_v26  ;;  %v1785_v49 = vshrl.u32 %v3737_v6, 16 }
  0xa9   : > { %v2126_v39 = vsel %vm4747_vm6, %v3788_v61, %v2125_v47  ;;  %v2127_v30 = vrot.slane %v2125_v47, 4  ;;  %v1788_v20 = vshll.u32 %v3737_v6, 16  ;;  %v1794_v13 = vshll.u32 %v5158_v27, 16 }
  0xaa   : > { %v1639_v52 = vsel %vm4494_vm3, %v1634_v2, %v1638_v11  ;;  %v1787_v44 = vrot.slane %v1785_v49, 4  ;;  %v1798_v24 = vshrl.u32 %v5158_v27, 16  ;;  %v1804_v10 = vshll.u32 %v5161_v12, 16 }
  0xab   : > { %4042 = vmatpush3.bf16.xpose.msra.mxu0 %v5009_v8  ;;  %v3755_v53 = vcombine.low %v1629_v22, %v1639_v52  ;;  %v2129_v37 = vsel %vm4747_vm6, %v2127_v30, %v2128_v57  ;;  %v1790_v43 = vrot.slane %v1788_v20, 5  ;;  %v1796_v58 = vrot.slane %v1794_v13, 5  ;;  %v3735_v22 = vld [vmem:[%s4466_s5 + $0x94] sm:$0xf]  ;;  %v3710_v52 = vld [vmem:[%s4466_s5 + $0x30] sm:$0xf] }
  0xac   : > { %4185 = vmatprep.subr.msk.bf16.mxu0 %vm667_vm0, %v5030_v3  ;;  %4062 = vmatmul.mubr.msk.bf16.vlgmr.msra.gmra.mxu1 %vm667_vm0, %v4792_v14  ;;  %v3805_v5 = vcombine.low %v2126_v39, %v2129_v37  ;;  %v1800_v19 = vrot.slane %v1798_v24, 4  ;;  %v1806_v36 = vrot.slane %v1804_v10, 5  ;;  %v1593_v8 = vshrl.u32 %v3713_v63, 16  ;;  %v3736_v39 = vld [vmem:[%s4466_s5 + $0x98] sm:$0x1] }
  0xad   : > { %4082 = vmatpush3.bf16.xpose.msra.mxu1 %v5070_v16  ;;  %v5202_v31 = vsel %vm667_vm0, %v3755_v53, 0  ;;  %v1791_v29 = vor.u32 %v1790_v43, %v1787_v44  ;;  %v1596_v46 = vshll.u32 %v3713_v63, 16  ;;  %v1602_v3 = vshll.u32 %v5176_v59, 16  ;;  %4097 = vmatprep.mubr.msk.bf16.mxu1 %vm667_vm0, %v5188_v33  ;;  %v3711_v44 = vld [vmem:[%s4466_s5 + $0x34] sm:$0xf] }
  0xae   : > { %4194 = vmatprep.subr.msk.bf16.mxu1 %vm667_vm0, %v3814_v9  ;;  %v5213_v14 = vsel %vm667_vm0, %v3805_v5, 0  ;;  %v1801_v16 = vor.u32 %v1800_v19, %v1796_v58  ;;  %v1595_v25 = vrot.slane %v1593_v8, 4  ;;  %v1606_v55 = vshrl.u32 %v5176_v59, 16  ;;  %v5264_v37 = vld [vmem:[%s4466_s5 + $0x38] sm:$0x1] }
  0xaf   : > { %v1792_v42 = vrot.slane %v1791_v29, 4  ;;  %v1598_v38 = vrot.slane %v1596_v46, 5  ;;  %v1604_v51 = vrot.slane %v1602_v3, 5  ;;  %v1612_v41 = vshll.u32 %v5198_v34, 16  ;;  %v3778_v3 = vld [vmem:[%s4466_s5 + $0x90] sm:$0xe] }
  0xb0   : > { %v1802_v9 = vrot.slane %v1801_v16, 4  ;;  %v1608_v11 = vrot.slane %v1606_v55, 4  ;;  %v3795_v21 = vrot.slane %v3779_v45, 9  ;;  %v2174_v56 = vrot.slane %v5158_v27, 5 }
  0xb1   : > { %v1797_v18 = vsel %vm4494_vm3, %v1792_v42, %v1796_v58  ;;  %v1599_v6 = vor.u32 %v1598_v38, %v1595_v25  ;;  %v1614_v23 = vrot.slane %v1612_v41, 5  ;;  %v2177_v35 = vrot.slane %v5161_v12, 5 }
  0xb2   : > { %4044 = vmatmul.mubr.msk.bf16.vlgmr.msra.gmra.mxu0 %vm667_vm0, %v4837_v40  ;;  %v1807_v17 = vsel %vm4494_vm3, %v1802_v9, %v1806_v36  ;;  %v1609_v61 = vor.u32 %v1608_v11, %v1604_v51  ;;  %v5234_v47 = vsel %vm4747_vm6, %v3795_v21, %v2174_v56  ;;  %v2176_v27 = vrot.slane %v2174_v56, 4  ;;  %v3770_v21 = vld [vmem:[%s4466_s5 + $0x30] sm:$0xe] }
  0xb3   : > { %4064 = vmatpush3.bf16.xpose.msra.mxu0 %v5062_v1  ;;  %v5237_v57 = vcombine.low %v1797_v18, %v1807_v17  ;;  %v1600_v63 = vrot.slane %v1599_v6, 4  ;;  %v3787_v12 = vrot.slane %v3771_v0, 9  ;;  %v2118_v40 = vrot.slane %v5176_v59, 5  ;;  %4079 = vmatprep.mubr.msk.bf16.mxu0 %vm667_vm0, %v5220_v32 }
  0xb4   : > { %4186 = vmatprep.subr.msk.bf16.mxu0 %vm667_vm0, %v5097_v60  ;;  %v1610_v2 = vrot.slane %v1609_v61, 4  ;;  %v2178_v49 = vsel %vm4747_vm6, %v2176_v27, %v2177_v35  ;;  %v2121_v1 = vrot.slane %v5198_v34, 5  ;;  %v1761_v30 = vshrl.u32 %v3734_v62, 16 }
  0xb5   : > { %4084 = vmatpush3.bf16.xpose.msra.mxu1 %v5132_v15  ;;  %v1605_v59 = vsel %vm4494_vm3, %v1600_v63, %v1604_v51  ;;  %v3812_v20 = vcombine.low %v5234_v47, %v2178_v49  ;;  %v2119_v13 = vsel %vm4747_vm6, %v3787_v12, %v2118_v40  ;;  %v2120_v60 = vrot.slane %v2118_v40, 4  ;;  %v5286_v47 = vld [vmem:[%s4466_s5 + $0x88] sm:$0xf] }
  0xb6   : > { %4195 = vmatprep.subr.msk.bf16.mxu1 %vm667_vm0, %v3813_v50  ;;  %v1615_v24 = vsel %vm4494_vm3, %v1610_v2, %v1614_v23  ;;  %v1763_v15 = vrot.slane %v1761_v30, 4  ;;  %v1764_v10 = vshll.u32 %v3734_v62, 16  ;;  %v1770_v53 = vshll.u32 %v3735_v22, 16  ;;  %v3731_v23 = vld [vmem:[%s4466_s5 + $0x84] sm:$0xf] }
  0xb7   : > { %v3754_v43 = vcombine.low %v1605_v59, %v1615_v24  ;;  %v2122_v58 = vsel %vm4747_vm6, %v2120_v60, %v2121_v1  ;;  %v1774_v5 = vshrl.u32 %v3735_v22, 16  ;;  %v1780_v19 = vshll.u32 %v3736_v39, 16  ;;  %v5294_v1 = vld [vmem:[%s4466_s5 + $0x8c] sm:$0x1] }
  0xb8   : > { %v3804_v36 = vcombine.low %v2119_v13, %v2122_v58  ;;  %v1766_v34 = vrot.slane %v1764_v10, 5  ;;  %v1772_v54 = vrot.slane %v1770_v53, 5  ;;  %v1569_v26 = vshrl.u32 %v3710_v52, 16 }
  0xb9   : > { %v5269_v50 = vsel %vm667_vm0, %v3754_v43, 0  ;;  %v1776_v8 = vrot.slane %v1774_v5, 4  ;;  %v1782_v29 = vrot.slane %v1780_v19, 5  ;;  %v1572_v46 = vshll.u32 %v3710_v52, 16  ;;  %v3708_v43 = vld [vmem:[%s4466_s5 + $0x28] sm:$0xf] }
  0xba   : > { %v2266_v45 = vsel %vm667_vm0, %v3804_v36, 0  ;;  %v1767_v16 = vor.u32 %v1766_v34, %v1763_v15  ;;  %v1571_v25 = vrot.slane %v1569_v26, 4  ;;  %v1578_v55 = vshll.u32 %v3711_v44, 16  ;;  %v3707_v15 = vld [vmem:[%s4466_s5 + $0x24] sm:$0xf] }
  0xbb   : > { %4066 = vmatpush3.bf16.xpose.msra.mxu0 %v5129_v4  ;;  %v1777_v0 = vor.u32 %v1776_v8, %v1772_v54  ;;  %v1574_v42 = vrot.slane %v1572_v46, 5  ;;  %v1582_v38 = vshrl.u32 %v3711_v44, 16  ;;  %v1588_v51 = vshll.u32 %v5264_v37, 16  ;;  %v3709_v26 = vld [vmem:[%s4466_s5 + $0x2c] sm:$0x1] }
  0xbc   : > { %4187 = vmatprep.subr.msk.bf16.mxu0 %vm667_vm0, %v5163_v7  ;;  %v1768_v41 = vrot.slane %v1767_v16, 4  ;;  %v1580_v62 = vrot.slane %v1578_v55, 5  ;;  %v3794_v9 = vrot.slane %v3778_v3, 9  ;;  %v2167_v11 = vrot.slane %v3735_v22, 5  ;;  %v3777_v16 = vld [vmem:[%s4466_s5 + $0x84] sm:$0xe] }
  0xbd   : > { %4086 = vmatpush3.bf16.xpose.msra.mxu1 %v5213_v14  ;;  %v1778_v56 = vrot.slane %v1777_v0, 4  ;;  %v1575_v18 = vor.u32 %v1574_v42, %v1571_v25  ;;  %v1584_v4 = vrot.slane %v1582_v38, 4  ;;  %v1590_v6 = vrot.slane %v1588_v51, 5 }
  0xbe   : > { %4196 = vmatprep.subr.msk.bf16.mxu1 %vm667_vm0, %v3812_v20  ;;  %v1773_v35 = vsel %vm4494_vm3, %v1768_v41, %v1772_v54  ;;  %v2168_v7 = vsel %vm4747_vm6, %v3794_v9, %v2167_v11  ;;  %v2169_v17 = vrot.slane %v2167_v11, 4  ;;  %v2170_v61 = vrot.slane %v3736_v39, 5 }
  0xbf   : > { %v1783_v14 = vsel %vm4494_vm3, %v1778_v56, %v1782_v29  ;;  %v1576_v27 = vrot.slane %v1575_v18, 4  ;;  %v1585_v63 = vor.u32 %v1584_v4, %v1580_v62  ;;  %v3786_v12 = vrot.slane %v3770_v21, 9  ;;  %v3769_v56 = vld [vmem:[%s4466_s5 + $0x24] sm:$0xe] }
  0xc0   : > { %v3761_v40 = vcombine.low %v1773_v35, %v1783_v14  ;;  %v2171_v22 = vsel %vm4747_vm6, %v2169_v17, %v2170_v61  ;;  %v2111_v2 = vrot.slane %v3711_v44, 5  ;;  %v2114_v49 = vrot.slane %v5264_v37, 5  ;;  %v3728_v35 = vld [vmem:[%s4466_s5 + $0x78] sm:$0xf] }
  0xc1   : > { %v1581_v39 = vsel %vm4494_vm3, %v1576_v27, %v1580_v62  ;;  %v1586_v30 = vrot.slane %v1585_v63, 4  ;;  %v3811_v59 = vcombine.low %v2168_v7, %v2171_v22  ;;  %v1737_v20 = vshrl.u32 %v3731_v23, 16  ;;  %v3729_v22 = vld [vmem:[%s4466_s5 + $0x7c] sm:$0xf] }
  0xc2   : > { %v2112_v13 = vsel %vm4747_vm6, %v3786_v12, %v2111_v2  ;;  %v2113_v60 = vrot.slane %v2111_v2, 4  ;;  %v1740_v52 = vshll.u32 %v3731_v23, 16  ;;  %v1746_v24 = vshll.u32 %v5286_v47, 16 }
  0xc3   : > { %4068 = vmatpush3.bf16.xpose.msra.mxu0 %v5202_v31  ;;  %v1591_v44 = vsel %vm4494_vm3, %v1586_v30, %v1590_v6  ;;  %v1739_v10 = vrot.slane %v1737_v20, 4  ;;  %v1750_v53 = vshrl.u32 %v5286_v47, 16  ;;  %v1756_v37 = vshll.u32 %v5294_v1, 16 }
  0xc4   : > { %4188 = vmatprep.subr.msk.bf16.mxu0 %vm667_vm0, %v5237_v57  ;;  %v3753_v58 = vcombine.low %v1581_v39, %v1591_v44  ;;  %v2115_v5 = vsel %vm4747_vm6, %v2113_v60, %v2114_v49  ;;  %v1742_v19 = vrot.slane %v1740_v52, 5  ;;  %v1748_v36 = vrot.slane %v1746_v24, 5 }
  0xc5   : > { %4088 = vmatpush3.bf16.xpose.msra.mxu1 %v2266_v45  ;;  %v3803_v31 = vcombine.low %v2112_v13, %v2115_v5  ;;  %v1752_v34 = vrot.slane %v1750_v53, 4  ;;  %v1758_v54 = vrot.slane %v1756_v37, 5  ;;  %v1545_v8 = vshrl.u32 %v3707_v15, 16  ;;  %v3704_v13 = vld [vmem:[%s4466_s5 + $0x18] sm:$0xf] }
  0xc6   : > { %v5314_v29 = vsel %vm667_vm0, %v3753_v58, 0  ;;  %4197 = vmatprep.subr.msk.bf16.mxu1 %vm667_vm0, %v3811_v59  ;;  %v1743_v46 = vor.u32 %v1742_v19, %v1739_v10  ;;  %v1548_v57 = vshll.u32 %v3707_v15, 16  ;;  %v1554_v3 = vshll.u32 %v3708_v43, 16 }
  0xc7   : > { %v2263_v25 = vsel %vm667_vm0, %v3803_v31, 0  ;;  %v1753_v55 = vor.u32 %v1752_v34, %v1748_v36  ;;  %v1547_v45 = vrot.slane %v1545_v8, 4  ;;  %v1558_v0 = vshrl.u32 %v3708_v43, 16 }
  0xc8   : > { %v1744_v42 = vrot.slane %v1743_v46, 4  ;;  %v1550_v38 = vrot.slane %v1548_v57, 5  ;;  %v1556_v51 = vrot.slane %v1554_v3, 5  ;;  %v1564_v41 = vshll.u32 %v3709_v26, 16  ;;  %v3776_v46 = vld [vmem:[%s4466_s5 + $0x78] sm:$0xe] }
  0xc9   : > { %v1754_v62 = vrot.slane %v1753_v55, 4  ;;  %v1560_v9 = vrot.slane %v1558_v0, 4  ;;  %v3793_v11 = vrot.slane %v3777_v16, 9  ;;  %v2160_v21 = vrot.slane %v5286_v47, 5 }
  0xca   : > { %v1749_v18 = vsel %vm4494_vm3, %v1744_v42, %v1748_v36  ;;  %v1551_v4 = vor.u32 %v1550_v38, %v1547_v45  ;;  %v1566_v6 = vrot.slane %v1564_v41, 5  ;;  %v2163_v23 = vrot.slane %v5294_v1, 5  ;;  %v3730_v1 = vld [vmem:[%s4466_s5 + $0x80] sm:$0x1] }
  0xcb   : > { %4070 = vmatpush3.bf16.xpose.msra.mxu0 %v5269_v50  ;;  %v1759_v7 = vsel %vm4494_vm3, %v1754_v62, %v1758_v54  ;;  %v1561_v17 = vor.u32 %v1560_v9, %v1556_v51  ;;  %v2161_v61 = vsel %vm4747_vm6, %v3793_v11, %v2160_v21  ;;  %v2162_v47 = vrot.slane %v2160_v21, 4  ;;  %v3706_v36 = vld [vmem:[%s4466_s5 + $0x20] sm:$0x1]  ;;  %v3768_v9 = vld [vmem:[%s4466_s5 + $0x18] sm:$0xe] }
  0xcc   : > { %4189 = vmatprep.subr.msk.bf16.mxu0 %vm667_vm0, %v3761_v40  ;;  %v3760_v14 = vcombine.low %v1749_v18, %v1759_v7  ;;  %v1552_v27 = vrot.slane %v1551_v4, 4  ;;  %v3785_v63 = vrot.slane %v3769_v56, 9  ;;  %v2104_v12 = vrot.slane %v3708_v43, 5  ;;  %v3705_v43 = vld [vmem:[%s4466_s5 + $0x1c] sm:$0xf] }
  0xcd   : > { %4090 = vmatpush3.bf16.xpose.msra.mxu1 %v2263_v25  ;;  %v1562_v2 = vrot.slane %v1561_v17, 4  ;;  %v2164_v50 = vsel %vm4747_vm6, %v2162_v47, %v2163_v23  ;;  %v2107_v49 = vrot.slane %v3709_v26, 5  ;;  %v1713_v39 = vshrl.u32 %v3728_v35, 16 }
  0xce   : > { %v1557_v30 = vsel %vm4494_vm3, %v1552_v27, %v1556_v51  ;;  %v3810_v59 = vcombine.low %v2161_v61, %v2164_v50  ;;  %v2105_v40 = vsel %vm4747_vm6, %v3785_v63, %v2104_v12  ;;  %v2106_v20 = vrot.slane %v2104_v12, 4 }
  0xcf   : > { %v1567_v60 = vsel %vm4494_vm3, %v1562_v2, %v1566_v6  ;;  %v1715_v52 = vrot.slane %v1713_v39, 4  ;;  %v1716_v24 = vshll.u32 %v3728_v35, 16  ;;  %v1722_v15 = vshll.u32 %v3729_v22, 16  ;;  %v3725_v35 = vld [vmem:[%s4466_s5 + $0x6c] sm:$0xf] }
  0xd0   : > { %v3752_v44 = vcombine.low %v1557_v30, %v1567_v60  ;;  %4198 = vmatprep.subr.msk.bf16.mxu1 %vm667_vm0, %v3810_v59  ;;  %v2108_v10 = vsel %vm4747_vm6, %v2106_v20, %v2107_v49  ;;  %v1726_v53 = vshrl.u32 %v3729_v22, 16  ;;  %v1732_v37 = vshll.u32 %v3730_v1, 16  ;;  %v5364_v2 = vld [vmem:[%s4466_s5 + $0x74] sm:$0x1] }
  0xd1   : > { %v3802_v58 = vcombine.low %v2105_v40, %v2108_v10  ;;  %v1718_v5 = vrot.slane %v1716_v24, 5  ;;  %v1724_v19 = vrot.slane %v1722_v15, 5  ;;  %v1521_v31 = vshrl.u32 %v3704_v13, 16 }
  0xd2   : > { %v1940_v34 = vsel %vm667_vm0, %v3752_v44, 0  ;;  %v1728_v54 = vrot.slane %v1726_v53, 4  ;;  %v1734_v26 = vrot.slane %v1732_v37, 5  ;;  %v1524_v8 = vshll.u32 %v3704_v13, 16  ;;  %v3701_v13 = vld [vmem:[%s4466_s5 + $0xc] sm:$0xf] }
  0xd3   : > { %4072 = vmatpush3.bf16.xpose.msra.mxu0 %v5314_v29  ;;  %v2260_v57 = vsel %vm667_vm0, %v3802_v58, 0  ;;  %v1719_v3 = vor.u32 %v1718_v5, %v1715_v52  ;;  %v1523_v16 = vrot.slane %v1521_v31, 4  ;;  %v1530_v25 = vshll.u32 %v3705_v43, 16  ;;  %v3702_v44 = vld [vmem:[%s4466_s5 + $0x10] sm:$0xf] }
  0xd4   : > { %4190 = vmatprep.subr.msk.bf16.mxu0 %vm667_vm0, %v3760_v14  ;;  %v1729_v55 = vor.u32 %v1728_v54, %v1724_v19  ;;  %v1526_v45 = vrot.slane %v1524_v8, 5  ;;  %v1534_v0 = vshrl.u32 %v3705_v43, 16  ;;  %v1540_v42 = vshll.u32 %v3706_v36, 16  ;;  %v3726_v14 = vld [vmem:[%s4466_s5 + $0x70] sm:$0xf] }
  0xd5   : > { %4092 = vmatpush3.bf16.xpose.msra.mxu1 %v2260_v57  ;;  %v1720_v38 = vrot.slane %v1719_v3, 4  ;;  %v1532_v51 = vrot.slane %v1530_v25, 5  ;;  %v3792_v41 = vrot.slane %v3776_v46, 9  ;;  %v2153_v62 = vrot.slane %v3729_v22, 5  ;;  %v3775_v46 = vld [vmem:[%s4466_s5 + $0x6c] sm:$0xe] }
  0xd6   : > { %v1730_v29 = vrot.slane %v1729_v55, 4  ;;  %v1527_v11 = vor.u32 %v1526_v45, %v1523_v16  ;;  %v1536_v21 = vrot.slane %v1534_v0, 4  ;;  %v1542_v56 = vrot.slane %v1540_v42, 5 }
  0xd7   : > { %v1725_v18 = vsel %vm4494_vm3, %v1720_v38, %v1724_v19  ;;  %v2154_v4 = vsel %vm4747_vm6, %v3792_v41, %v2153_v62  ;;  %v2155_v6 = vrot.slane %v2153_v62, 4  ;;  %v2156_v23 = vrot.slane %v3730_v1, 5  ;;  %v4298_v38 = vld [vmem:[%s4466_s5 + $0x6c] sm:$0xff]  }
  0xd8   : > { %v1735_v7 = vsel %vm4494_vm3, %v1730_v29, %v1734_v26  ;;  %v1528_v17 = vrot.slane %v1527_v11, 4  ;;  %v1537_v61 = vor.u32 %v1536_v21, %v1532_v51  ;;  %v3784_v47 = vrot.slane %v3768_v9, 9  ;;  %v3767_v29 = vld [vmem:[%s4466_s5 + $0xc] sm:$0xe] }
  0xd9   : > { %v3759_v27 = vcombine.low %v1725_v18, %v1735_v7  ;;  %v2157_v63 = vsel %vm4747_vm6, %v2155_v6, %v2156_v23  ;;  %v2097_v12 = vrot.slane %v3705_v43, 5  ;;  %v2100_v22 = vrot.slane %v3706_v36, 5  ;;  %v3703_v36 = vld [vmem:[%s4466_s5 + $0x14] sm:$0x1]  ;;  %v3912_v7 = vld [vmem:[%s4466_s5 + $0xcc] sm:$0xf] }
  0xda   : > { %v1533_v50 = vsel %vm4494_vm3, %v1528_v17, %v1532_v51  ;;  %v1538_v49 = vrot.slane %v1537_v61, 4  ;;  %v3809_v1 = vcombine.low %v2154_v4, %v2157_v63  ;;  %v1689_v39 = vshrl.u32 %v3725_v35, 16 }
  0xdb   : > { %4074 = vmatpush3.bf16.xpose.msra.mxu0 %v1940_v34  ;;  %v2098_v30 = vsel %vm4747_vm6, %v3784_v47, %v2097_v12  ;;  %v2099_v59 = vrot.slane %v2097_v12, 4  ;;  %v1692_v40 = vshll.u32 %v3725_v35, 16  ;;  %v1698_v20 = vshll.u32 %v3726_v14, 16 }
  0xdc   : > { %4191 = vmatprep.subr.msk.bf16.mxu0 %vm667_vm0, %v3759_v27  ;;  %v1543_v60 = vsel %vm4494_vm3, %v1538_v49, %v1542_v56  ;;  %4199 = vmatprep.subr.msk.bf16.mxu1 %vm667_vm0, %v3809_v1  ;;  %v1691_v52 = vrot.slane %v1689_v39, 4  ;;  %v1702_v24 = vshrl.u32 %v3726_v14, 16  ;;  %v1708_v15 = vshll.u32 %v5364_v2, 16  ;;  %v5394_v27 = vld [vmem:[%s4466_s5 + $0xd0] sm:$0xf] }
  0xdd   : > { %v3751_v10 = vcombine.low %v1533_v50, %v1543_v60  ;;  %v2101_v53 = vsel %vm4747_vm6, %v2099_v59, %v2100_v22  ;;  %v1694_v37 = vrot.slane %v1692_v40, 5  ;;  %v1700_v43 = vrot.slane %v1698_v20, 5  ;;  %v5402_v50 = vld [vmem:[%s4466_s5 + $0xd4] sm:$0x1]  ;;  %v3888_v60 = vld [vmem:[%s4466_s5 + $0x6c] sm:$0xf] }
  0xde   : > { %v3801_v58 = vcombine.low %v2098_v30, %v2101_v53  ;;  %v1704_v5 = vrot.slane %v1702_v24, 4  ;;  %v1710_v19 = vrot.slane %v1708_v15, 5  ;;  %v1497_v31 = vshrl.u32 %v3701_v13, 16  ;;  %v4297_v15 = vld [vmem:[%s4466_s5 + $0xcc] sm:$0xff]  }
  0xdf   : > { %v1937_v34 = vsel %vm667_vm0, %v3751_v10, 0  ;;  %v1695_v54 = vor.u32 %v1694_v37, %v1691_v52  ;;  %v1500_v26 = vshll.u32 %v3701_v13, 16  ;;  %v1506_v8 = vshll.u32 %v3702_v44, 16  ;;  %v5420_v53 = vld [vmem:[%s4466_s5 + $0x70] sm:$0xf] }
  0xe0   : > { %v2257_v57 = vsel %vm667_vm0, %v3801_v58, 0  ;;  %v1705_v3 = vor.u32 %v1704_v5, %v1700_v43  ;;  %v1499_v16 = vrot.slane %v1497_v31, 4  ;;  %v1510_v25 = vshrl.u32 %v3702_v44, 16 }
  0xe1   : > { %4094 = vmatpush3.bf16.xpose.msra.mxu1 %v2257_v57  ;;  %v1696_v55 = vrot.slane %v1695_v54, 4  ;;  %v1502_v45 = vrot.slane %v1500_v26, 5  ;;  %v1508_v0 = vrot.slane %v1506_v8, 5  ;;  %v1516_v42 = vshll.u32 %v3703_v36, 16 }
  0xe2   : > { %v1706_v51 = vrot.slane %v1705_v3, 4  ;;  %v1512_v41 = vrot.slane %v1510_v25, 4  ;;  %v3791_v62 = vrot.slane %v3775_v46, 9  ;;  %v2146_v9 = vrot.slane %v3726_v14, 5 }
  0xe3   : > { %4076 = vmatpush3.bf16.xpose.msra.mxu0 %v1937_v34  ;;  %v1701_v11 = vsel %vm4494_vm3, %v1696_v55, %v1700_v43  ;;  %v1503_v21 = vor.u32 %v1502_v45, %v1499_v16  ;;  %v1518_v56 = vrot.slane %v1516_v42, 5  ;;  %v2149_v18 = vrot.slane %v5364_v2, 5  ;;  %v3909_v16 = vld [vmem:[%s4466_s5 + $0xc0] sm:$0xf]  ;;  %v5434_v42 = vld [vmem:[%s4466_s5 + $0xc4] sm:$0xf] }
  0xe4   : > { %v1711_v4 = vsel %vm4494_vm3, %v1706_v51, %v1710_v19  ;;  %v1513_v6 = vor.u32 %v1512_v41, %v1508_v0  ;;  %v2147_v23 = vsel %vm4747_vm6, %v3791_v62, %v2146_v9  ;;  %v2148_v35 = vrot.slane %v2146_v9, 4  ;;  %v5423_v19 = vld [vmem:[%s4466_s5 + $0x74] sm:$0x1] }
  0xe5   : > { %v3758_v17 = vcombine.low %v1701_v11, %v1711_v4  ;;  %v1504_v61 = vrot.slane %v1503_v21, 4  ;;  %v3783_v47 = vrot.slane %v3767_v29, 9  ;;  %v2090_v14 = vrot.slane %v3702_v44, 5  ;;  %v5442_v4 = vld [vmem:[%s4466_s5 + $0xc8] sm:$0x1] }
  0xe6   : > { %v1514_v63 = vrot.slane %v1513_v6, 4  ;;  %v2150_v12 = vsel %vm4747_vm6, %v2148_v35, %v2149_v18  ;;  %v2093_v22 = vrot.slane %v3703_v36, 5  ;;  %v5399_v2 = vsel %vm667_vm0, %v4298_v38, 0  ;;  %v4300_v36 = vld [vmem:[%s4466_s5 + $0x60] sm:$0xff]  }
  0xe7   : > { %4192 = vmatprep.subr.msk.bf16.mxu0 %vm667_vm0, %v3758_v17  ;;  %v1509_v49 = vsel %vm4494_vm3, %v1504_v61, %v1508_v0  ;;  %v3808_v1 = vcombine.low %v2147_v23, %v2150_v12  ;;  %v2091_v39 = vsel %vm4747_vm6, %v3783_v47, %v2090_v14  ;;  %v2092_v30 = vrot.slane %v2090_v14, 4  ;;  %v3885_v35 = vld [vmem:[%s4466_s5 + $0x60] sm:$0xf] }
  0xe8   : > { %v1519_v59 = vsel %vm4494_vm3, %v1514_v63, %v1518_v56  ;;  %v2962_v40 = vshrl.u32 %v3912_v7, 16  ;;  %v2965_v20 = vshll.u32 %v3912_v7, 16  ;;  %v2971_v13 = vshll.u32 %v5394_v27, 16  ;;  %v4299_v61 = vld [vmem:[%s4466_s5 + $0xc0] sm:$0xff]  }
  0xe9   : > { %v3750_v52 = vcombine.low %v1509_v49, %v1519_v59  ;;  %4200 = vmatprep.subr.msk.bf16.mxu1 %vm667_vm0, %v3808_v1  ;;  %v2094_v24 = vsel %vm4747_vm6, %v2092_v30, %v2093_v22  ;;  %v2975_v44 = vshrl.u32 %v5394_v27, 16  ;;  %v2981_v10 = vshll.u32 %v5402_v50, 16  ;;  %v5451_v63 = vld [vmem:[%s4466_s5 + $0x64] sm:$0xf]  ;;  %v5457_v30 = vld [vmem:[%s5890_s1 + $0x18] sm:$0xf] }
  0xea   : > { %v3800_v37 = vcombine.low %v2091_v39, %v2094_v24  ;;  %v2964_v43 = vrot.slane %v2962_v40, 4  ;;  %v2967_v58 = vrot.slane %v2965_v20, 5  ;;  %v2973_v5 = vrot.slane %v2971_v13, 5  ;;  %v4302_v39 = vld [vmem:[%s4466_s5 + $0x54] sm:$0xff]   ;;  %v5473_v24 = vld [vmem:[%s4466_s5 + $0x68] sm:$0x1] }
  0xeb   : > { %v1934_v31 = vsel %vm667_vm0, %v3750_v52, 0  ;;  %v2977_v34 = vrot.slane %v2975_v44, 4  ;;  %v2983_v54 = vrot.slane %v2981_v10, 5  ;;  %v2770_v26 = vshrl.u32 %v3888_v60, 16 }
  0xec   : > { %4078 = vmatpush3.bf16.xpose.msra.mxu0 %v1934_v31  ;;  %v2254_v8 = vsel %vm667_vm0, %v3800_v37, 0  ;;  %v2968_v46 = vor.u32 %v2967_v58, %v2964_v43  ;;  %v2773_v57 = vshll.u32 %v3888_v60, 16  ;;  %v2779_v3 = vshll.u32 %v5420_v53, 16  ;;  %v5465_v60 = vld [vmem:[%s5890_s1 + $0x1c] sm:$0xf] }
  0xed   : > { %4096 = vmatpush3.bf16.xpose.msra.mxu1 %v2254_v8  ;;  %4201 = vmatprep.subr.msk.bf16.mxu0 %vm667_vm0, %v4297_v15  ;;  %v2978_v25 = vor.u32 %v2977_v34, %v2973_v5  ;;  %v2772_v55 = vrot.slane %v2770_v26, 4  ;;  %v2783_v45 = vshrl.u32 %v5420_v53, 16  ;;  %v2789_v0 = vshll.u32 %v5423_v19, 16  ;;  %v3906_v43 = vld [vmem:[%s4466_s5 + $0xb4] sm:$0xf] }
  0xee   : > { %v2969_v38 = vrot.slane %v2968_v46, 4  ;;  %v2775_v51 = vrot.slane %v2773_v57, 5  ;;  %v2781_v41 = vrot.slane %v2779_v3, 5  ;;  %v5437_v62 = vsel %vm667_vm0, %v4300_v36, 0  ;;  %v5491_v46 = vld [vmem:[%s4466_s5 + $0xb8] sm:$0xf] }
  0xef   : > { %v2979_v9 = vrot.slane %v2978_v25, 4  ;;  %v2785_v29 = vrot.slane %v2783_v45, 4  ;;  %v2791_v11 = vrot.slane %v2789_v0, 5  ;;  %v2938_v21 = vshrl.u32 %v3909_v16, 16  ;;  %v5497_v25 = vld [vmem:[%s4466_s5 + $0xbc] sm:$0x1] }
  0xf0   : > { %v2974_v56 = vsel %vm4494_vm3, %v2969_v38, %v2973_v5  ;;  %v2776_v18 = vor.u32 %v2775_v51, %v2772_v55  ;;  %v2941_v6 = vshll.u32 %v3909_v16, 16  ;;  %v2947_v23 = vshll.u32 %v5434_v42, 16  ;;  %v4301_v51 = vld [vmem:[%s4466_s5 + $0xb4] sm:$0xff]  }
  0xf1   : > { %v2984_v7 = vsel %vm4494_vm3, %v2979_v9, %v2983_v54  ;;  %v2786_v17 = vor.u32 %v2785_v29, %v2781_v41  ;;  %v2940_v47 = vrot.slane %v2938_v21, 4  ;;  %v2951_v14 = vshrl.u32 %v5434_v42, 16  ;;  %v3882_v9 = vld [vmem:[%s4466_s5 + $0x54] sm:$0xf] }
  0xf2   : > { %v3931_v12 = vcombine.low %v2974_v56, %v2984_v7  ;;  %v2777_v22 = vrot.slane %v2776_v18, 4  ;;  %v2943_v49 = vrot.slane %v2941_v6, 5  ;;  %v2949_v1 = vrot.slane %v2947_v23, 5  ;;  %v5507_v7 = vld [vmem:[%s4466_s5 + $0x58] sm:$0xf] }
  0xf3   : > { %4080 = vmatmul.mubr.msk.bf16.vlgmr.msra.gmra.mxu0 %vm667_vm0, %v5220_v32  ;;  %v2787_v59 = vrot.slane %v2786_v17, 4  ;;  %v2953_v40 = vrot.slane %v2951_v14, 4  ;;  %v2957_v20 = vshll.u32 %v5442_v4, 16  ;;  %v2746_v13 = vshrl.u32 %v3885_v35, 16 }
  0xf4   : > { %4100 = vmatpush3.bf16.xpose.msra.mxu0 %v5399_v2  ;;  %4098 = vmatmul.mubr.msk.bf16.vlgmr.msra.gmra.mxu1 %vm667_vm0, %v5188_v33  ;;  %v2782_v52 = vsel %vm4494_vm3, %v2777_v22, %v2781_v41  ;;  %v2944_v32 = vor.u32 %v2943_v49, %v2940_v47  ;;  %v2749_v15 = vshll.u32 %v3885_v35, 16  ;;  %v2755_v44 = vshll.u32 %v5451_v63, 16  ;;  %v5514_v47 = vld [vmem:[%s4466_s5 + $0x5c] sm:$0x1] }
  0xf5   : > { %4209 = vmatprep.subr.msk.bf16.mxu1 %vm667_vm0, %v3931_v12  ;;  %v2792_v10 = vsel %vm4494_vm3, %v2787_v59, %v2791_v11  ;;  %4202 = vmatprep.subr.msk.bf16.mxu0 %vm667_vm0, %v4299_v61  ;;  %v2954_v2 = vor.u32 %v2953_v40, %v2949_v1  ;;  %v2959_v37 = vrot.slane %v2957_v20, 5  ;;  %v2748_v33 = vrot.slane %v2746_v13, 4  ;;  %v4304_v59 = vld [vmem:[%s4466_s5 + $0x48] sm:$0xff]  }
  0xf6   : > { %v3923_v58 = vcombine.low %v2782_v52, %v2792_v10  ;;  %v2945_v5 = vrot.slane %v2944_v32, 4  ;;  %v2751_v36 = vrot.slane %v2749_v15, 5  ;;  %v2757_v31 = vrot.slane %v2755_v44, 5  ;;  %4115 = vmatprep.mubr.msk.bf16.mxu0 %vm667_vm0, %v5457_v30  ;;  %4133 = vmatprep.mubr.msk.bf16.mxu1 %vm667_vm0, %v5465_v60  ;;  %v3903_v10 = vld [vmem:[%s4466_s5 + $0xa8] sm:$0xf] }
  0xf7   : > { %v2955_v34 = vrot.slane %v2954_v2, 4  ;;  %v2759_v54 = vshrl.u32 %v5451_v63, 16  ;;  %v2765_v26 = vshll.u32 %v5473_v24, 16  ;;  %v5488_v8 = vsel %vm667_vm0, %v4302_v39, 0 }
  0xf8   : > { %v3060_v57 = vsel %vm667_vm0, %v3923_v58, 0  ;;  %v2950_v3 = vsel %vm4494_vm3, %v2945_v5, %v2949_v1  ;;  %v2752_v16 = vor.u32 %v2751_v36, %v2748_v33  ;;  %v2914_v55 = vshrl.u32 %v3906_v43, 16  ;;  %v5525_v58 = vld [vmem:[%s4466_s5 + $0xac] sm:$0xf] }
  0xf9   : > { %4118 = vmatpush3.bf16.xpose.msra.mxu1 %v3060_v57  ;;  %v2960_v45 = vsel %vm4494_vm3, %v2955_v34, %v2959_v37  ;;  %v2761_v0 = vrot.slane %v2759_v54, 4  ;;  %v2767_v38 = vrot.slane %v2765_v26, 5  ;;  %v2917_v41 = vshll.u32 %v3906_v43, 16  ;;  %v4303_v34 = vld [vmem:[%s4466_s5 + $0xa8] sm:$0xff]   ;;  %v5532_v26 = vld [vmem:[%s4466_s5 + $0xb0] sm:$0x1] }
  0xfa   : > { %v3930_v29 = vcombine.low %v2950_v3, %v2960_v45  ;;  %v2753_v11 = vrot.slane %v2752_v16, 4  ;;  %v2916_v21 = vrot.slane %v2914_v55, 4  ;;  %v2923_v56 = vshll.u32 %v5491_v46, 16  ;;  %v3879_v45 = vld [vmem:[%s4466_s5 + $0x48] sm:$0xf] }
  0xfb   : > { %v2762_v18 = vor.u32 %v2761_v0, %v2757_v31  ;;  %v2919_v6 = vrot.slane %v2917_v41, 5  ;;  %v2927_v23 = vshrl.u32 %v5491_v46, 16  ;;  %v2933_v35 = vshll.u32 %v5497_v25, 16 }
  0xfc   : > { %4102 = vmatpush3.bf16.xpose.msra.mxu0 %v5437_v62  ;;  %4210 = vmatprep.subr.msk.bf16.mxu1 %vm667_vm0, %v3930_v29  ;;  %v2758_v17 = vsel %vm4494_vm3, %v2753_v11, %v2757_v31  ;;  %v2925_v61 = vrot.slane %v2923_v56, 5  ;;  %v2722_v14 = vshrl.u32 %v3882_v9, 16  ;;  %v2725_v12 = vshll.u32 %v3882_v9, 16  ;;  %v5541_v9 = vld [vmem:[%s4466_s5 + $0x4c] sm:$0xf] }
  0xfd   : > { %v2763_v22 = vrot.slane %v2762_v18, 4  ;;  %4203 = vmatprep.subr.msk.bf16.mxu0 %vm667_vm0, %v4301_v51  ;;  %v2920_v49 = vor.u32 %v2919_v6, %v2916_v21  ;;  %v2929_v1 = vrot.slane %v2927_v23, 4  ;;  %v2935_v39 = vrot.slane %v2933_v35, 5 }
  0xfe   : > { %v2724_v62 = vrot.slane %v2722_v14, 4  ;;  %v2727_v40 = vrot.slane %v2725_v12, 5  ;;  %v2731_v20 = vshll.u32 %v5507_v7, 16  ;;  %v2735_v13 = vshrl.u32 %v5507_v7, 16 }
  0xff   : > { %v2768_v52 = vsel %vm4494_vm3, %v2763_v22, %v2767_v38  ;;  %v2921_v32 = vrot.slane %v2920_v49, 4  ;;  %v2930_v15 = vor.u32 %v2929_v1, %v2925_v61  ;;  %v2741_v44 = vshll.u32 %v5514_v47, 16  ;;  %v4306_v22 = vld [vmem:[%s4466_s5 + $0x3c] sm:$0xff]  }
 0x100   : > { %v3922_v2 = vcombine.low %v2758_v17, %v2768_v52  ;;  %v2728_v37 = vor.u32 %v2727_v40, %v2724_v62  ;;  %v2733_v33 = vrot.slane %v2731_v20, 5  ;;  %v2737_v43 = vrot.slane %v2735_v13, 4  ;;  %v5552_v17 = vld [vmem:[%s4466_s5 + $0x50] sm:$0x1]  ;;  %v3900_v62 = vld [vmem:[%s4466_s5 + $0x9c] sm:$0xf] }
 0x101   : > { %v2926_v5 = vsel %vm4494_vm3, %v2921_v32, %v2925_v61  ;;  %v2931_v36 = vrot.slane %v2930_v15, 4  ;;  %v2743_v31 = vrot.slane %v2741_v44, 5  ;;  %v2475_v54 = vsel %vm667_vm0, %v4304_v59, 0  ;;  %v4305_v32 = vld [vmem:[%s4466_s5 + $0x9c] sm:$0xff]  }
 0x102   : > { %v3057_v57 = vsel %vm667_vm0, %v3922_v2, 0  ;;  %v2729_v3 = vrot.slane %v2728_v37, 4  ;;  %v2738_v16 = vor.u32 %v2737_v43, %v2733_v33  ;;  %v2890_v55 = vshrl.u32 %v3903_v10, 16  ;;  %v5562_v37 = vld [vmem:[%s4466_s5 + $0xa0] sm:$0xf] }
 0x103   : > { %4120 = vmatpush3.bf16.xpose.msra.mxu1 %v3057_v57  ;;  %v2936_v0 = vsel %vm4494_vm3, %v2931_v36, %v2935_v39  ;;  %v2893_v38 = vshll.u32 %v3903_v10, 16  ;;  %v2899_v51 = vshll.u32 %v5525_v58, 16  ;;  %v2903_v41 = vshrl.u32 %v5525_v58, 16  ;;  %v5566_v36 = vld [vmem:[%s4466_s5 + $0xa4] sm:$0x1] }
 0x104   : > { %4104 = vmatpush3.bf16.xpose.msra.mxu0 %v5488_v8  ;;  %v3929_v29 = vcombine.low %v2926_v5, %v2936_v0  ;;  %v2734_v11 = vsel %vm4494_vm3, %v2729_v3, %v2733_v33  ;;  %v2739_v21 = vrot.slane %v2738_v16, 4  ;;  %v2892_v56 = vrot.slane %v2890_v55, 4  ;;  %v3876_v55 = vld [vmem:[%s4466_s5 + $0x3c] sm:$0xf] }
 0x105   : > { %4204 = vmatprep.subr.msk.bf16.mxu0 %vm667_vm0, %v4303_v34  ;;  %v2895_v18 = vrot.slane %v2893_v38, 5  ;;  %v2901_v6 = vrot.slane %v2899_v51, 5  ;;  %v2905_v23 = vrot.slane %v2903_v41, 4  ;;  %v2909_v35 = vshll.u32 %v5532_v26, 16 }
 0x106   : > { %4211 = vmatprep.subr.msk.bf16.mxu1 %vm667_vm0, %v3929_v29  ;;  %v2744_v8 = vsel %vm4494_vm3, %v2739_v21, %v2743_v31  ;;  %v2698_v61 = vshrl.u32 %v3879_v45, 16  ;;  %v2701_v14 = vshll.u32 %v3879_v45, 16  ;;  %v2707_v12 = vshll.u32 %v5541_v9, 16 }
 0x107   : > { %v3921_v49 = vcombine.low %v2734_v11, %v2744_v8  ;;  %v2896_v1 = vor.u32 %v2895_v18, %v2892_v56  ;;  %v2906_v39 = vor.u32 %v2905_v23, %v2901_v6  ;;  %v2911_v59 = vrot.slane %v2909_v35, 5  ;;  %v5578_v56 = vld [vmem:[%s4466_s5 + $0x40] sm:$0xf]  ;;  %v4308_v35 = vld [vmem:[%s4466_s5 + $0x30] sm:$0xff]  }
 0x108   : > { %v2700_v40 = vrot.slane %v2698_v61, 4  ;;  %v2703_v20 = vrot.slane %v2701_v14, 5  ;;  %v2709_v13 = vrot.slane %v2707_v12, 5  ;;  %v2711_v52 = vshrl.u32 %v5541_v9, 16 }
 0x109   : > { %v3054_v15 = vsel %vm667_vm0, %v3921_v49, 0  ;;  %v2897_v44 = vrot.slane %v2896_v1, 4  ;;  %v2907_v10 = vrot.slane %v2906_v39, 4  ;;  %v2717_v2 = vshll.u32 %v5552_v17, 16 }
 0x10a   : > { %v2704_v33 = vor.u32 %v2703_v20, %v2700_v40  ;;  %v2713_v43 = vrot.slane %v2711_v52, 4  ;;  %v2472_v5 = vsel %vm667_vm0, %v4306_v22, 0  ;;  %v2866_v31 = vshrl.u32 %v3900_v62, 16  ;;  %v5585_v22 = vld [vmem:[%s4466_s5 + $0x44] sm:$0x1]  ;;  %v4307_v52 = vld [vmem:[%s4466_s5 + $0x90] sm:$0xff]  }
 0x10b   : > { %4122 = vmatpush3.bf16.xpose.msra.mxu1 %v3054_v15  ;;  %v2902_v34 = vsel %vm4494_vm3, %v2897_v44, %v2901_v6  ;;  %v2912_v57 = vsel %vm4494_vm3, %v2907_v10, %v2911_v59  ;;  %v2719_v3 = vrot.slane %v2717_v2, 5  ;;  %v2869_v16 = vshll.u32 %v3900_v62, 16 }
 0x10c   : > { %4106 = vmatpush3.bf16.xpose.msra.mxu0 %v2475_v54  ;;  %v3928_v45 = vcombine.low %v2902_v34, %v2912_v57  ;;  %v2705_v0 = vrot.slane %v2704_v33, 4  ;;  %v2714_v38 = vor.u32 %v2713_v43, %v2709_v13  ;;  %v2868_v51 = vrot.slane %v2866_v31, 4  ;;  %v5596_v33 = vld [vmem:[%s4466_s5 + $0x94] sm:$0xf] }
 0x10d   : > { %4205 = vmatprep.subr.msk.bf16.mxu0 %vm667_vm0, %v4305_v32  ;;  %v2871_v41 = vrot.slane %v2869_v16, 5  ;;  %v2875_v29 = vshll.u32 %v5562_v37, 16  ;;  %v2879_v11 = vshrl.u32 %v5562_v37, 16  ;;  %v2885_v21 = vshll.u32 %v5566_v36, 16  ;;  %v3897_v32 = vld [vmem:[%s4466_s5 + $0x90] sm:$0xf] }
 0x10e   : > { %4212 = vmatprep.subr.msk.bf16.mxu1 %vm667_vm0, %v3928_v45  ;;  %v2710_v54 = vsel %vm4494_vm3, %v2705_v0, %v2709_v13  ;;  %v2715_v18 = vrot.slane %v2714_v38, 4  ;;  %v2674_v6 = vshrl.u32 %v3876_v55, 16  ;;  %v2677_v23 = vshll.u32 %v3876_v55, 16  ;;  %v5602_v55 = vld [vmem:[%s4466_s5 + $0x98] sm:$0x1] }
 0x10f   : > { %v2872_v8 = vor.u32 %v2871_v41, %v2868_v51  ;;  %v2877_v61 = vrot.slane %v2875_v29, 5  ;;  %v2881_v14 = vrot.slane %v2879_v11, 4  ;;  %v2887_v12 = vrot.slane %v2885_v21, 5  ;;  %v3873_v11 = vld [vmem:[%s4466_s5 + $0x30] sm:$0xf] }
 0x110   : > { %v2720_v49 = vsel %vm4494_vm3, %v2715_v18, %v2719_v3  ;;  %v2676_v1 = vrot.slane %v2674_v6, 4  ;;  %v2679_v39 = vrot.slane %v2677_v23, 5  ;;  %v2683_v59 = vshll.u32 %v5578_v56, 16 }
 0x111   : > { %v3920_v62 = vcombine.low %v2710_v54, %v2720_v49  ;;  %v2873_v40 = vrot.slane %v2872_v8, 4  ;;  %v2882_v20 = vor.u32 %v2881_v14, %v2877_v61  ;;  %v2687_v13 = vshrl.u32 %v5578_v56, 16 }
 0x112   : > { %v2680_v15 = vor.u32 %v2679_v39, %v2676_v1  ;;  %v2685_v44 = vrot.slane %v2683_v59, 5  ;;  %v2693_v10 = vshll.u32 %v5585_v22, 16  ;;  %v2469_v2 = vsel %vm667_vm0, %v4308_v35, 0  ;;  %v4310_v59 = vld [vmem:[%s4466_s5 + $0x24] sm:$0xff]  }
 0x113   : > { %v3051_v43 = vsel %vm667_vm0, %v3920_v62, 0  ;;  %v2878_v31 = vsel %vm4494_vm3, %v2873_v40, %v2877_v61  ;;  %v2883_v34 = vrot.slane %v2882_v20, 4  ;;  %v2689_v57 = vrot.slane %v2687_v13, 4 }
 0x114   : > { %4124 = vmatpush3.bf16.xpose.msra.mxu1 %v3051_v43  ;;  %4108 = vmatpush3.bf16.xpose.msra.mxu0 %v2472_v5  ;;  %v2681_v3 = vrot.slane %v2680_v15, 4  ;;  %v2695_v16 = vrot.slane %v2693_v10, 5  ;;  %v2842_v45 = vshrl.u32 %v3897_v32, 16  ;;  %v2845_v0 = vshll.u32 %v3897_v32, 16  ;;  %v5611_v5 = vld [vmem:[%s4466_s5 + $0x34] sm:$0xf] }
 0x115   : > { %v2888_v38 = vsel %vm4494_vm3, %v2883_v34, %v2887_v12  ;;  %v2690_v51 = vor.u32 %v2689_v57, %v2685_v44  ;;  %4206 = vmatprep.subr.msk.bf16.mxu0 %vm667_vm0, %v4307_v52  ;;  %v2851_v41 = vshll.u32 %v5596_v33, 16  ;;  %v2855_v29 = vshrl.u32 %v5596_v33, 16  ;;  %v5618_v12 = vld [vmem:[%s4466_s5 + $0x38] sm:$0x1]  ;;  %v4309_v52 = vld [vmem:[%s4466_s5 + $0x84] sm:$0xff]  }
 0x116   : > { %v3927_v21 = vcombine.low %v2878_v31, %v2888_v38  ;;  %v2686_v54 = vsel %vm4494_vm3, %v2681_v3, %v2685_v44  ;;  %v2844_v18 = vrot.slane %v2842_v45, 4  ;;  %v2847_v6 = vrot.slane %v2845_v0, 5  ;;  %v3894_v43 = vld [vmem:[%s4466_s5 + $0x84] sm:$0xf]  ;;  %v5629_v45 = vld [vmem:[%s4466_s5 + $0x88] sm:$0xf] }
 0x117   : > { %v2691_v23 = vrot.slane %v2690_v51, 4  ;;  %v2853_v35 = vrot.slane %v2851_v41, 5  ;;  %v2857_v8 = vrot.slane %v2855_v29, 4  ;;  %v2861_v61 = vshll.u32 %v5602_v55, 16  ;;  %v5636_v41 = vld [vmem:[%s4466_s5 + $0x8c] sm:$0x1] }
 0x118   : > { %4213 = vmatprep.subr.msk.bf16.mxu1 %vm667_vm0, %v3927_v21  ;;  %v2848_v14 = vor.u32 %v2847_v6, %v2844_v18  ;;  %v2650_v49 = vshrl.u32 %v3873_v11, 16  ;;  %v2653_v1 = vshll.u32 %v3873_v11, 16  ;;  %v2659_v39 = vshll.u32 %v5611_v5, 16 }
 0x119   : > { %v2696_v62 = vsel %vm4494_vm3, %v2691_v23, %v2695_v16  ;;  %v2858_v40 = vor.u32 %v2857_v8, %v2853_v35  ;;  %v2863_v20 = vrot.slane %v2861_v61, 5  ;;  %v2663_v13 = vshrl.u32 %v5611_v5, 16 }
 0x11a   : > { %v3919_v32 = vcombine.low %v2686_v54, %v2696_v62  ;;  %v2849_v15 = vrot.slane %v2848_v14, 4  ;;  %v2652_v44 = vrot.slane %v2650_v49, 4  ;;  %v2655_v10 = vrot.slane %v2653_v1, 5  ;;  %v5646_v1 = vld [vmem:[%s4466_s5 + $0x28] sm:$0xf] }
 0x11b   : > { %v2859_v31 = vrot.slane %v2858_v40, 4  ;;  %v2661_v34 = vrot.slane %v2659_v39, 5  ;;  %v2665_v57 = vrot.slane %v2663_v13, 4  ;;  %v2669_v3 = vshll.u32 %v5618_v12, 16  ;;  %v5652_v40 = vld [vmem:[%s4466_s5 + $0x2c] sm:$0x1] }
 0x11c   : > { %v3048_v16 = vsel %vm667_vm0, %v3919_v32, 0  ;;  %4110 = vmatpush3.bf16.xpose.msra.mxu0 %v2469_v2  ;;  %v2854_v0 = vsel %vm4494_vm3, %v2849_v15, %v2853_v35  ;;  %v2656_v38 = vor.u32 %v2655_v10, %v2652_v44  ;;  %v2466_v51 = vsel %vm667_vm0, %v4310_v59, 0  ;;  %v3870_v2 = vld [vmem:[%s4466_s5 + $0x24] sm:$0xf]  ;;  %v4312_v13 = vld [vmem:[%s4466_s5 + $0x18] sm:$0xff]  }
 0x11d   : > { %4126 = vmatpush3.bf16.xpose.msra.mxu1 %v3048_v16  ;;  %v2864_v29 = vsel %vm4494_vm3, %v2859_v31, %v2863_v20  ;;  %v2666_v11 = vor.u32 %v2665_v57, %v2661_v34  ;;  %v2671_v21 = vrot.slane %v2669_v3, 5  ;;  %4207 = vmatprep.subr.msk.bf16.mxu0 %vm667_vm0, %v4309_v52  ;;  %v2818_v54 = vshrl.u32 %v3894_v43, 16  ;;  %v4311_v10 = vld [vmem:[%s4466_s5 + $0x78] sm:$0xff]  }
 0x11e   : > { %v3926_v18 = vcombine.low %v2854_v0, %v2864_v29  ;;  %v2657_v6 = vrot.slane %v2656_v38, 4  ;;  %v2821_v23 = vshll.u32 %v3894_v43, 16  ;;  %v2827_v35 = vshll.u32 %v5629_v45, 16 }
 0x11f   : > { %v2667_v8 = vrot.slane %v2666_v11, 4  ;;  %v2820_v61 = vrot.slane %v2818_v54, 4  ;;  %v2831_v14 = vshrl.u32 %v5629_v45, 16  ;;  %v2837_v49 = vshll.u32 %v5636_v41, 16  ;;  %v5663_v11 = vld [vmem:[%s4466_s5 + $0x7c] sm:$0xf] }
 0x120   : > { %4214 = vmatprep.subr.msk.bf16.mxu1 %vm667_vm0, %v3926_v18  ;;  %v2662_v39 = vsel %vm4494_vm3, %v2657_v6, %v2661_v34  ;;  %v2823_v59 = vrot.slane %v2821_v23, 5  ;;  %v2829_v62 = vrot.slane %v2827_v35, 5  ;;  %v2626_v20 = vshrl.u32 %v3870_v2, 16  ;;  %v3891_v34 = vld [vmem:[%s4466_s5 + $0x78] sm:$0xf] }
 0x121   : > { %v2672_v52 = vsel %vm4494_vm3, %v2667_v8, %v2671_v21  ;;  %v2833_v32 = vrot.slane %v2831_v14, 4  ;;  %v2839_v15 = vrot.slane %v2837_v49, 5  ;;  %v2629_v44 = vshll.u32 %v3870_v2, 16  ;;  %v5671_v14 = vld [vmem:[%s4466_s5 + $0x80] sm:$0x1] }
 0x122   : > { %v3918_v43 = vcombine.low %v2662_v39, %v2672_v52  ;;  %v2824_v31 = vor.u32 %v2823_v59, %v2820_v61  ;;  %v2628_v57 = vrot.slane %v2626_v20, 4  ;;  %v2635_v3 = vshll.u32 %v5646_v1, 16 }
 0x123   : > { %v2834_v16 = vor.u32 %v2833_v32, %v2829_v62  ;;  %v2631_v0 = vrot.slane %v2629_v44, 5  ;;  %v2639_v38 = vshrl.u32 %v5646_v1, 16  ;;  %v2645_v29 = vshll.u32 %v5652_v40, 16  ;;  %v3867_v32 = vld [vmem:[%s4466_s5 + $0x18] sm:$0xf] }
 0x124   : > { %v3045_v21 = vsel %vm667_vm0, %v3918_v43, 0  ;;  %4112 = vmatpush3.bf16.xpose.msra.mxu0 %v2466_v51  ;;  %v2825_v54 = vrot.slane %v2824_v31, 4  ;;  %v2637_v2 = vrot.slane %v2635_v3, 5  ;;  %v2463_v18 = vsel %vm667_vm0, %v4312_v13, 0  ;;  %v5679_v44 = vld [vmem:[%s4466_s5 + $0x1c] sm:$0xf] }
 0x125   : > { %4128 = vmatpush3.bf16.xpose.msra.mxu1 %v3045_v21  ;;  %v2835_v6 = vrot.slane %v2834_v16, 4  ;;  %v2632_v23 = vor.u32 %v2631_v0, %v2628_v57  ;;  %v2641_v35 = vrot.slane %v2639_v38, 4  ;;  %v2647_v8 = vrot.slane %v2645_v29, 5  ;;  %4208 = vmatprep.subr.msk.bf16.mxu0 %vm667_vm0, %v4311_v10  ;;  %v5686_v0 = vld [vmem:[%s4466_s5 + $0x20] sm:$0x1] }
 0x126   : > { %v2830_v61 = vsel %vm4494_vm3, %v2825_v54, %v2829_v62  ;;  %v2794_v49 = vshrl.u32 %v3891_v34, 16  ;;  %v2797_v51 = vshll.u32 %v3891_v34, 16  ;;  %v2803_v39 = vshll.u32 %v5663_v11, 16 }
 0x127   : > { %v2840_v59 = vsel %vm4494_vm3, %v2835_v6, %v2839_v15  ;;  %v2633_v20 = vrot.slane %v2632_v23, 4  ;;  %v2642_v13 = vor.u32 %v2641_v35, %v2637_v2  ;;  %v2807_v52 = vshrl.u32 %v5663_v11, 16  ;;  %v3948_v35 = vld [vmem:[%s4466_s5 + $0xcc] sm:$0xe] }
 0x128   : > { %v3925_v10 = vcombine.low %v2830_v61, %v2840_v59  ;;  %v2796_v43 = vrot.slane %v2794_v49, 4  ;;  %v2799_v62 = vrot.slane %v2797_v51, 5  ;;  %v2805_v31 = vrot.slane %v2803_v39, 5 }
 0x129   : > { %v2638_v57 = vsel %vm4494_vm3, %v2633_v20, %v2637_v2  ;;  %v2643_v3 = vrot.slane %v2642_v13, 4  ;;  %v2809_v34 = vrot.slane %v2807_v52, 4  ;;  %v2813_v15 = vshll.u32 %v5671_v14, 16 }
 0x12a   : > { %4215 = vmatprep.subr.msk.bf16.mxu1 %vm667_vm0, %v3925_v10  ;;  %v2800_v16 = vor.u32 %v2799_v62, %v2796_v43  ;;  %v2602_v38 = vshrl.u32 %v3867_v32, 16  ;;  %v2605_v29 = vshll.u32 %v3867_v32, 16  ;;  %v2611_v21 = vshll.u32 %v5679_v44, 16  ;;  %v3940_v10 = vld [vmem:[%s4466_s5 + $0x6c] sm:$0xe] }
 0x12b   : > { %v2648_v54 = vsel %vm4494_vm3, %v2643_v3, %v2647_v8  ;;  %v2810_v6 = vor.u32 %v2809_v34, %v2805_v31  ;;  %v2815_v23 = vrot.slane %v2813_v15, 5  ;;  %v2615_v2 = vshrl.u32 %v5679_v44, 16 }
 0x12c   : > { %v3917_v61 = vcombine.low %v2638_v57, %v2648_v54  ;;  %4114 = vmatpush3.bf16.xpose.msra.mxu0 %v2463_v18  ;;  %v2801_v49 = vrot.slane %v2800_v16, 4  ;;  %v2604_v51 = vrot.slane %v2602_v38, 4  ;;  %v2607_v39 = vrot.slane %v2605_v29, 5  ;;  %v925_v59 = vpop.f32.mrf.mxu1  ;;  %v3947_v38 = vld [vmem:[%s4466_s5 + $0xc0] sm:$0xe] }
 0x12d   : > { %v2811_v20 = vrot.slane %v2810_v6, 4  ;;  %v2613_v13 = vrot.slane %v2611_v21, 5  ;;  %v2617_v52 = vrot.slane %v2615_v2, 4  ;;  %v2621_v32 = vshll.u32 %v5686_v0, 16 }
 0x12e   : > { %v3042_v8 = vsel %vm667_vm0, %v3917_v61, 0  ;;  %v2806_v43 = vsel %vm4494_vm3, %v2801_v49, %v2805_v31  ;;  %v2608_v62 = vor.u32 %v2607_v39, %v2604_v51  ;;  %v3964_v3 = vrot.slane %v3948_v35, 9  ;;  %v927_v57 = vpop.f32.mrf.mxu1 }
 0x12f   : > { %4130 = vmatpush3.bf16.xpose.msra.mxu1 %v3042_v8  ;;  %v2816_v18 = vsel %vm4494_vm3, %v2811_v20, %v2815_v23  ;;  %v2618_v34 = vor.u32 %v2617_v52, %v2613_v13  ;;  %v2623_v15 = vrot.slane %v2621_v32, 5  ;;  %v3300_v16 = vrot.slane %v5394_v27, 5  ;;  %v5709_v23 = vld [vmem:[%s5890_s1 + $0x20] sm:$0xf] }
 0x130   : > { %v3924_v29 = vcombine.low %v2806_v43, %v2816_v18  ;;  %v2609_v21 = vrot.slane %v2608_v62, 4  ;;  %v3303_v54 = vrot.slane %v5402_v50, 5  ;;  %v3956_v6 = vrot.slane %v3940_v10, 9  ;;  %v929_v2 = vpop.f32.mrf.mxu1  ;;  %v3939_v52 = vld [vmem:[%s4466_s5 + $0x60] sm:$0xe] }
 0x131   : > { %v2619_v31 = vrot.slane %v2618_v34, 4  ;;  %v3301_v35 = vsel %vm4747_vm6, %v3964_v3, %v3300_v16  ;;  %v3302_v61 = vrot.slane %v3300_v16, 4  ;;  %v3244_v49 = vrot.slane %v5420_v53, 5  ;;  %v3946_v3 = vld [vmem:[%s4466_s5 + $0xb4] sm:$0xe] }
 0x132   : > { %4216 = vmatprep.subr.msk.bf16.mxu1 %vm667_vm0, %v3924_v29  ;;  %v2614_v27 = vsel %vm4494_vm3, %v2609_v21, %v2613_v13  ;;  %v753_v50 = vpop.f32.mrf.mxu0  ;;  %v3247_v51 = vrot.slane %v5423_v19, 5  ;;  %v3963_v39 = vrot.slane %v3947_v38, 9  ;;  %v3293_v20 = vrot.slane %v5434_v42, 5  ;;  %v930_v32 = vpop.f32.mrf.mxu1 }
 0x133   : > { %v2624_v53 = vsel %vm4494_vm3, %v2619_v31, %v2623_v15  ;;  %v5719_v10 = vadd.f32 %v925_v59, %v753_v50  ;;  %4116 = vmatmul.mubr.msk.bf16.vlgmr.msra.gmra.mxu0 %vm667_vm0, %v5457_v30  ;;  %v3304_v13 = vsel %vm4747_vm6, %v3302_v61, %v3303_v54  ;;  %v3245_v8 = vsel %vm4747_vm6, %v3956_v6, %v3244_v49  ;;  %v3938_v54 = vld [vmem:[%s4466_s5 + $0x54] sm:$0xe] }
 0x134   : > { %v3916_v19 = vcombine.low %v2614_v27, %v2624_v53  ;;  %v3981_v43 = vcombine.low %v3301_v35, %v3304_v13  ;;  %v3246_v42 = vrot.slane %v3244_v49, 4  ;;  %v755_v62 = vpop.f32.mrf.mxu0  ;;  %v3294_v28 = vsel %vm4747_vm6, %v3963_v39, %v3293_v20  ;;  %4151 = vmatprep.mubr.msk.bf16.mxu0 %vm667_vm0, %v5709_v23 }
 0x135   : > { %v5732_v59 = vadd.f32 %v927_v57, %v755_v62  ;;  %v3295_v30 = vrot.slane %v3293_v20, 4  ;;  %v3296_v18 = vrot.slane %v5442_v4, 5  ;;  %v3955_v34 = vrot.slane %v3939_v52, 9 }
 0x136   : > { %v3039_v15 = vsel %vm667_vm0, %v3916_v19, 0  ;;  %4217 = vmatprep.subr.msk.bf16.mxu0 %vm667_vm0, %v3981_v43  ;;  %v3248_v16 = vsel %vm4747_vm6, %v3246_v42, %v3247_v51  ;;  %v757_v38 = vpop.f32.mrf.mxu0  ;;  %v3237_v29 = vrot.slane %v5451_v63, 5  ;;  %v3240_v21 = vrot.slane %v5473_v24, 5  ;;  %v3937_v51 = vld [vmem:[%s4466_s5 + $0x48] sm:$0xe] }
 0x137   : > { %4132 = vmatpush3.bf16.xpose.msra.mxu1 %v3039_v15  ;;  %v3973_v57 = vcombine.low %v3245_v8, %v3248_v16  ;;  %v3297_v4 = vsel %vm4747_vm6, %v3295_v30, %v3296_v18  ;;  %v3962_v6 = vrot.slane %v3946_v3, 9  ;;  %v3286_v2 = vrot.slane %v5491_v46, 5  ;;  %v3945_v43 = vld [vmem:[%s4466_s5 + $0xa8] sm:$0xe]  ;;  %v3944_v38 = vld [vmem:[%s4466_s5 + $0x9c] sm:$0xe] }
 0x138   : > { %v758_v31 = vpop.f32.mrf.mxu0  ;;  %v3980_v35 = vcombine.low %v3294_v28, %v3297_v4  ;;  %v3238_v61 = vsel %vm4747_vm6, %v3955_v34, %v3237_v29  ;;  %v3239_v49 = vrot.slane %v3237_v29, 4  ;;  %v3289_v63 = vrot.slane %v5497_v25, 5 }
 0x139   : > { %v3380_v27 = vsel %vm667_vm0, %v3973_v57, 0  ;;  %v3288_v24 = vrot.slane %v3286_v2, 4  ;;  %v3954_v50 = vrot.slane %v3938_v54, 9  ;;  %v3230_v46 = vrot.slane %v5507_v7, 5 }
 0x13a   : > { %4136 = vmatpush3.bf16.xpose.msra.mxu0 %v3380_v27  ;;  %v3241_v39 = vsel %vm4747_vm6, %v3239_v49, %v3240_v21  ;;  %v3233_v20 = vrot.slane %v5514_v47, 5  ;;  %v3287_v25 = vsel %vm4747_vm6, %v3962_v6, %v3286_v2  ;;  %v3279_v8 = vrot.slane %v5525_v58, 5  ;;  %v3936_v6 = vld [vmem:[%s4466_s5 + $0x3c] sm:$0xe] }
 0x13b   : > { %4218 = vmatprep.subr.msk.bf16.mxu0 %vm667_vm0, %v3980_v35  ;;  %v3972_v52 = vcombine.low %v3238_v61, %v3241_v39  ;;  %v3290_v32 = vsel %vm4747_vm6, %v3288_v24, %v3289_v63  ;;  %v3231_v53 = vsel %vm4747_vm6, %v3954_v50, %v3230_v46  ;;  %v3232_v13 = vrot.slane %v3230_v46, 4  ;;  %v3943_v63 = vld [vmem:[%s4466_s5 + $0x90] sm:$0xe] }
 0x13c   : > { %v3953_v19 = vrot.slane %v3937_v51, 9  ;;  %v3223_v7 = vrot.slane %v5541_v9, 5  ;;  %v3979_v47 = vcombine.low %v3287_v25, %v3290_v32  ;;  %v3226_v62 = vrot.slane %v5552_v17, 5 }
 0x13d   : > { %v3234_v42 = vsel %vm4747_vm6, %v3232_v13, %v3233_v20  ;;  %v3377_v28 = vsel %vm667_vm0, %v3972_v52, 0  ;;  %v3961_v18 = vrot.slane %v3945_v43, 9  ;;  %v3281_v9 = vrot.slane %v3279_v8, 4  ;;  %v3935_v20 = vld [vmem:[%s4466_s5 + $0x30] sm:$0xe] }
 0x13e   : > { %4134 = vmatmul.mubr.msk.bf16.vlgmr.msra.gmra.mxu1 %vm667_vm0, %v5465_v60  ;;  %v3971_v3 = vcombine.low %v3231_v53, %v3234_v42  ;;  %v3224_v58 = vsel %vm4747_vm6, %v3953_v19, %v3223_v7  ;;  %v3225_v30 = vrot.slane %v3223_v7, 4  ;;  %v3282_v34 = vrot.slane %v5532_v26, 5 }
 0x13f   : > { %v3280_v17 = vsel %vm4747_vm6, %v3961_v18, %v3279_v8  ;;  %v3272_v29 = vrot.slane %v5562_v37, 5  ;;  %v3960_v54 = vrot.slane %v3944_v38, 9  ;;  %v3275_v4 = vrot.slane %v5566_v36, 5  ;;  %v3942_v8 = vld [vmem:[%s4466_s5 + $0x84] sm:$0xe] }
 0x140   : > { %v3227_v60 = vsel %vm4747_vm6, %v3225_v30, %v3226_v62  ;;  %v3283_v16 = vsel %vm4747_vm6, %v3281_v9, %v3282_v34  ;;  %v3374_v21 = vsel %vm667_vm0, %v3971_v3, 0  ;;  %v3216_v2 = vrot.slane %v5578_v56, 5  ;;  %v3941_v34 = vld [vmem:[%s4466_s5 + $0x78] sm:$0xe] }
 0x141   : > { %v3970_v15 = vcombine.low %v3224_v58, %v3227_v60  ;;  %v3978_v26 = vcombine.low %v3280_v17, %v3283_v16  ;;  %v3274_v57 = vrot.slane %v3272_v29, 4  ;;  %v3273_v31 = vsel %vm4747_vm6, %v3960_v54, %v3272_v29 }
 0x142   : > { %4138 = vmatpush3.bf16.xpose.msra.mxu0 %v3377_v28  ;;  %v3952_v35 = vrot.slane %v3936_v6, 9  ;;  %v3218_v61 = vrot.slane %v3216_v2, 4  ;;  %v3219_v49 = vrot.slane %v5585_v22, 5  ;;  %v3265_v36 = vrot.slane %v5596_v33, 5  ;;  %v3934_v28 = vld [vmem:[%s4466_s5 + $0x24] sm:$0xe] }
 0x143   : > { %4219 = vmatprep.subr.msk.bf16.mxu0 %vm667_vm0, %v3979_v47  ;;  %v3276_v37 = vsel %vm4747_vm6, %v3274_v57, %v3275_v4  ;;  %v3371_v27 = vsel %vm667_vm0, %v3970_v15, 0  ;;  %v3959_v50 = vrot.slane %v3943_v63, 9  ;;  %v3268_v46 = vrot.slane %v5602_v55, 5 }
 0x144   : > { %v3977_v56 = vcombine.low %v3273_v31, %v3276_v37  ;;  %v3217_v24 = vsel %vm4747_vm6, %v3952_v35, %v3216_v2  ;;  %v3220_v51 = vsel %vm4747_vm6, %v3218_v61, %v3219_v49  ;;  %v3267_v39 = vrot.slane %v3265_v36, 4 }
 0x145   : > { %v3209_v22 = vrot.slane %v5611_v5, 5  ;;  %v3969_v33 = vcombine.low %v3217_v24, %v3220_v51  ;;  %v3266_v52 = vsel %vm4747_vm6, %v3959_v50, %v3265_v36  ;;  %v3951_v25 = vrot.slane %v3935_v20, 9 }
 0x146   : > { %v3269_v32 = vsel %vm4747_vm6, %v3267_v39, %v3268_v46  ;;  %v3212_v13 = vrot.slane %v5618_v12, 5  ;;  %v3258_v55 = vrot.slane %v5629_v45, 5  ;;  %v3958_v7 = vrot.slane %v3942_v8, 9 }
 0x147   : > { %v3211_v53 = vrot.slane %v3209_v22, 4  ;;  %v3368_v5 = vsel %vm667_vm0, %v3969_v33, 0  ;;  %v3976_v19 = vcombine.low %v3266_v52, %v3269_v32  ;;  %v3210_v43 = vsel %vm4747_vm6, %v3951_v25, %v3209_v22 }
 0x148   : > { %v3260_v42 = vrot.slane %v3258_v55, 4  ;;  %v3261_v62 = vrot.slane %v5636_v41, 5  ;;  %v3202_v12 = vrot.slane %v5646_v1, 5  ;;  %v3259_v3 = vsel %vm4747_vm6, %v3958_v7, %v3258_v55 }
 0x149   : > { %v3213_v47 = vsel %vm4747_vm6, %v3211_v53, %v3212_v13  ;;  %v3950_v58 = vrot.slane %v3934_v28, 9  ;;  %v3205_v9 = vrot.slane %v5652_v40, 5  ;;  %v3251_v41 = vrot.slane %v5663_v11, 5 }
 0x14a   : > { %4140 = vmatpush3.bf16.xpose.msra.mxu0 %v3374_v21  ;;  %v3968_v45 = vcombine.low %v3210_v43, %v3213_v47  ;;  %v3262_v30 = vsel %vm4747_vm6, %v3260_v42, %v3261_v62  ;;  %v3204_v18 = vrot.slane %v3202_v12, 4  ;;  %v3957_v17 = vrot.slane %v3941_v34, 9  ;;  %v3933_v21 = vld [vmem:[%s4466_s5 + $0x18] sm:$0xe]  ;;  %s164_s5 = scalar_lea.vmem [#allocation2], %s3579_s4 }
 0x14b   : > { %4220 = vmatprep.subr.msk.bf16.mxu0 %vm667_vm0, %v3978_v26  ;;  %v3975_v60 = vcombine.low %v3259_v3, %v3262_v30  ;;  %v3203_v15 = vsel %vm4747_vm6, %v3950_v58, %v3202_v12  ;;  %v3253_v38 = vrot.slane %v3251_v41, 4  ;;  %v3254_v29 = vrot.slane %v5671_v14, 5  ;;  %s3489_s10 = sshll.u32 %s164_s5, 4  ;;  %s3490_s10 = int_to_ptr.vmem [resolvable:$true] %s3489_s10 }
 0x14c   : > { %v3365_v1 = vsel %vm667_vm0, %v3968_v45, 0  ;;  %v3206_v16 = vsel %vm4747_vm6, %v3204_v18, %v3205_v9  ;;  %v3195_v26 = vrot.slane %v5679_v44, 5  ;;  %v3949_v11 = vrot.slane %v3933_v21, 9  ;;  %s4313_s17 = scalar_lea.vmem %s3490_s10, 128  ;;  %p4320_p0 = scmp.lt.s32.totalorder %s3490_s10, %s4318_s20 }
 0x14d   : > { %v3967_v40 = vcombine.low %v3203_v15, %v3206_v16  ;;  %v3252_v54 = vsel %vm4747_vm6, %v3957_v17, %v3251_v41  ;;  %v3255_v57 = vsel %vm4747_vm6, %v3253_v38, %v3254_v29  ;;  %v3198_v6 = vrot.slane %v5686_v0, 5  ;;  %p4314_p11 = scmp.ne.s32.totalorder %s3490_s10, %s4313_s17  ;;  %p4321_p1 = scmp.lt.s32.totalorder %s4319_s24, %s4313_s17 }
 0x14e   : > { %v3197_v4 = vrot.slane %v3195_v26, 4  ;;  %v3974_v14 = vcombine.low %v3252_v54, %v3255_v57  ;;  %v3196_v44 = vsel %vm4747_vm6, %v3949_v11, %v3195_v26 }
 0x14f   : > { %v3362_v2 = vsel %vm667_vm0, %v3967_v40, 0  ;;  %p4315_p12 = pnand %p4314_p11, %p4434_p5  ;;  %p4322_p2 = por %p4321_p1, %p4320_p0 }
 0x150   : > { %v3199_v31 = vsel %vm4747_vm6, %v3197_v4, %v3198_v6 }
 0x151   : > { %v3966_v35 = vcombine.low %v3196_v44, %v3199_v31  ;;  %p4316_p13 = pneg %p4315_p12 }
 0x152   : > { %4142 = vmatpush3.bf16.xpose.msra.mxu0 %v3371_v27 }
 0x153   : > { %4221 = vmatprep.subr.msk.bf16.mxu0 %vm667_vm0, %v3977_v56  ;;  %v3359_v49 = vsel %vm667_vm0, %v3966_v35, 0  ;;  %p4323_p3 = pnand %p4322_p2, %p4316_p13 }
 0x15a   : > { %4144 = vmatpush3.bf16.xpose.msra.mxu0 %v3368_v5 }
 0x15b   : > { %4222 = vmatprep.subr.msk.bf16.mxu0 %vm667_vm0, %v3976_v19 }
 0x162   : > { %4146 = vmatpush3.bf16.xpose.msra.mxu0 %v3365_v1 }
 0x163   : > { %4223 = vmatprep.subr.msk.bf16.mxu0 %vm667_vm0, %v3975_v60 }
 0x16a   : > { %4148 = vmatpush3.bf16.xpose.msra.mxu0 %v3362_v2 }
 0x16b   : > { %4224 = vmatprep.subr.msk.bf16.mxu0 %vm667_vm0, %v3974_v14 }
 0x16c   : > { %v1439_v37 = vpop.f32.mrf.mxu1 }
 0x16e   : > { %v1441_v61 = vpop.f32.mrf.mxu1 }
 0x170   : > { %v1443_v63 = vpop.f32.mrf.mxu1 }
 0x172   : > { %4150 = vmatpush3.bf16.xpose.msra.mxu0 %v3359_v49  ;;  %v1230_v0 = vpop.f32.mrf.mxu0  ;;  %v1444_v36 = vpop.f32.mrf.mxu1 }
 0x173   : > { %v1237_v27 = vadd.f32 %v1230_v0, %v5719_v10 }
 0x174   : > { %v1232_v56 = vpop.f32.mrf.mxu0 }
 0x175   : > { %v1238_v24 = vadd.f32 %v1232_v56, %v5732_v59  ;;  %v1446_v50 = vadd.f32 %v1439_v37, %v1237_v27 }
 0x176   : > { %v1234_v48 = vpop.f32.mrf.mxu0 }
 0x177   : > { %v1447_v51 = vadd.f32 %v1441_v61, %v1238_v24 }
 0x178   : > { %v1235_v39 = vpop.f32.mrf.mxu0 }
 0x179   : > { %4152 = vmatmul.mubr.msk.bf16.vlgmr.msra.gmra.mxu0 %vm667_vm0, %v5709_v23 }
 0x1b3   : > { %v2015_v46 = vpop.f32.mrf.mxu0 }
 0x1b4   : > { %v2022_v20 = vadd.f32 %v2015_v46, %v1446_v50  ;;  %v2335_v22 = vpop.f32.mrf.mxu1 }
 0x1b5   : > { %v2017_v33 = vpop.f32.mrf.mxu0 }
 0x1b6   : > { %v2023_v52 = vadd.f32 %v2017_v33, %v1447_v51  ;;  %v2342_v25 = vadd.f32 %v2335_v22, %v2022_v20  ;;  %v2337_v32 = vpop.f32.mrf.mxu1 }
 0x1b7   : > { %v2019_v53 = vpop.f32.mrf.mxu0 }
 0x1b8   : > { %v2343_v10 = vadd.f32 %v2337_v32, %v2023_v52  ;;  %v2339_v13 = vpop.f32.mrf.mxu1 }
 0x1b9   : > { %v2020_v8 = vpop.f32.mrf.mxu0 }
 0x1ba   : > { %v2340_v59 = vpop.f32.mrf.mxu1 }
 0x1f3   : > { %v2544_v55 = vpop.f32.mrf.mxu0 }
 0x1f4   : > { %v2551_v5 = vadd.f32 %v2544_v55, %v2342_v25 }
 0x1f5   : > { %v2546_v19 = vpop.f32.mrf.mxu0 }
 0x1f6   : > { %v2552_v43 = vadd.f32 %v2546_v19, %v2343_v10 }
 0x1f7   : > { %v2548_v7 = vpop.f32.mrf.mxu0 }
 0x1f9   : > { %v2549_v47 = vpop.f32.mrf.mxu0 }
 0x1fe   : > { %v3120_v23 = vpop.f32.mrf.mxu1 }
 0x1ff   : > { %v3127_v12 = vadd.f32 %v3120_v23, %v2551_v5 }
 0x200   : > { %v3122_v42 = vpop.f32.mrf.mxu1 }
 0x201   : > { %v3128_v3 = vadd.f32 %v3122_v42, %v2552_v43 }
 0x202   : > { %v3124_v62 = vpop.f32.mrf.mxu1 }
 0x204   : > { %v3125_v28 = vpop.f32.mrf.mxu1 }
 0x239   : > { %v3440_v45 = vpop.f32.mrf.mxu0 }
 0x23a   : > { %v3447_v58 = vadd.f32 %v3440_v45, %v3127_v12 }
 0x23b   : > { %v3442_v30 = vpop.f32.mrf.mxu0 }
 0x23c   : > { %v3448_v18 = vadd.f32 %v3442_v30, %v3128_v3  ;;  %v3463_v1 = vmul.f32 %v3447_v58, %v3447_v58 }
 0x23d   : > { %v3444_v9 = vpop.f32.mrf.mxu0 }
 0x23e   : > { %v3989_v34 = vpack.c.bf16 %v3448_v18, %v3447_v58  ;;  %v3458_v41 = vadd.f32 %v3448_v18, %v3447_v58  ;;  %v3464_v60 = vmul.f32 %v3448_v18, %v3448_v18 }
 0x23f   : > { %v3445_v15 = vpop.f32.mrf.mxu0 }
 0x240   : > { %3459 = vadd.xlane.f32.xlu0 %v3458_v41  ;;  %v3465_v17 = vadd.f32 %v3464_v60, %v3463_v1  ;;  %3457 = vst [vmem:[%s164_s5] sm:$0xff] %v3989_v34 }
 0x244   : > { %3466 = vadd.xlane.f32.xlu0 %v3465_v17 }
 0x245   : > { %4326 = shalt.err (!%p4323_p3)
}
 0x246   : > { %s4327_s16 = scalar_lea.hbm %s3487_s9, 128  ;;  %s4331_s27 = scalar_lea.hbm %s5891_s2, 256 }
 0x247   : > { %p4328_p4 = scmp.ne.s32.totalorder %s3487_s9, %s4327_s16  ;;  %p4332_p9 = scmp.lt.s32.totalorder %s3487_s9, %s5891_s2 }
 0x248   : > { %p4333_p10 = scmp.lt.s32.totalorder %s4331_s27, %s4327_s16 }
 0x249   : > { %p4329_p7 = pnand %p4328_p4, %p4434_p5 }
 0x24a   : > { %p4334_p11 = por %p4333_p10, %p4332_p9 }
 0x24b   : > { %p4330_p8 = pneg %p4329_p7 }
 0x24d   : > { %p4335_p12 = pnand %p4334_p11, %p4330_p8 }
 0x24f   : > { %4338 = shalt.err (!%p4335_p12)
}
 0x250   : > { %4226 = dma.vmem_to_hbm [thread:$0]  (%p4434_p5), %s3490_s10, 128, %s3487_s9, %s3471_s11   ;;  %vm3461_vm7 = vcmask 7168   ;;  %vm3468_vm8 = vcmask 15368  }
 0x251   : > { %s3581_s4 = sshll.u32 %s4456_s28, 3 }
 0x252   : > { %s179_s7 = scalar_lea.vmem %s5892_s3, %s3581_s4 }
 0x2c9   : > { %v3460_v16 = vpop.xlane.xlu0 %3459 }
 0x2ca   : > { %3462 = vst.msk [vmem:[%s179_s7] sm:$0xff] %vm3461_vm7, %v3460_v16 }
 0x2cd   : > { %v3467_v38 = vpop.xlane.xlu0 %3466 }
 0x2ce   : > { %3469 = vst.msk [vmem:[%s179_s7] sm:$0xff] %vm3468_vm8, %v3467_v38 }
 0x2cf PF: > { %p4232_p13 = scmp.ge.s32.totalorder %s4373_s15, 2  ;;  %s3504_s8 = sand.u32 1, %s4361_s12  }
 0x2d0   : > { %s3505_s22 = scalar_lea.sflag [#allocation3], %s3504_s8 }
 0x2d1   : > { %p4229_p0 = pnand %p4232_p13, %p4438_p6 }
 0x2d3   : > { %p4230_p5 = pneg %p4229_p0 }
 0x2d5   : > { %4356 = dma.done.wait (%p4230_p5), %s3505_s22, 128  }
 0x2d6   : > { %4358 = vsyncadd (%p4230_p5), %s3505_s22, 4294967168  ;;  %p14_p1 = scmp.ge.s32.totalorder %s4421_s18, 4   ;;  %s5899_s12 = smov %s4365_s13 }
 0x2d7   : > { %s5900_s13 = smov %s4369_s14  ;;  %s5901_s14 = smov %s4432_s21 }
 0x2d8   : > { %s5902_s15 = smov %s4421_s18  ;;  %16 = sbr.rel (!%p14_p1) target bundleno = 3 (0x3), region = 85 }
 0x2dd   :  { %3517 = vsyncpa [#allocation3], 1 }
 0x2de   :  { %3519 = vsyncpa [#allocation3 + $0x1], 1 }

</bundles_post_ra>
